<compile_context>
chip_gen: v7x
topology: tpu7x:2x2x1
jax: 0.10.0
libtpu: 0.0.40
codegen_flags: <defaults>
</compile_context>

<pallas_src>
import functools

import jax
import jax.numpy as jnp
from jax.experimental import pallas as pl
from jax.experimental.pallas import tpu as pltpu


def _transsage_kernel(adj_ref, xk_ref, xi_ref, rw_ref, r_ref, w2_ref,
                      hk_ref, out_ref, nb_acc, sum_acc, *, head: bool, nfeat: int):
    k = pl.program_id(1)

    # ---- accumulate unnormalized neighbor aggregate and adjacency row sums ----
    @pl.when(k == 0)
    def _():
        nb_acc[...] = jnp.zeros_like(nb_acc)
        sum_acc[...] = jnp.zeros_like(sum_acc)

    adj = adj_ref[...]                                                 # (TN, TK) bf16
    nb_acc[...] += jnp.dot(adj, xk_ref[...],                           # bf16 MXU, f32 acc
                           preferred_element_type=jnp.float32)
    # NOTE: assumes adj >= 0 (standard adjacency), so the L1 row norm equals the row
    # sum used for `norm`; one XLU reduction serves both.
    sum_acc[...] += jnp.sum(adj.astype(jnp.float32), axis=1, keepdims=True)

    # ---- finalize: normalization, Relation head, projections ----
    @pl.when(k == pl.num_programs(1) - 1)
    def _():
        x_blk = xi_ref[...]                                            # (TN, F) f32
        s = sum_acc[...]                                               # (TN, 1) f32
        inv_l1 = pl.reciprocal(jnp.maximum(s, 1e-12), approx=True)     # EUP
        neighbor = nb_acc[...] * inv_l1                                # == (adj/l1) @ x

        xb = x_blk.astype(jnp.bfloat16)
        nb = neighbor.astype(jnp.bfloat16)

        # One MXU call for all four Relation projections:
        #   [x | nb] @ [[G1^T, B1^T], [G2^T, B2^T]] -> [gamma_pre | beta_pre]
        cat_xn = jnp.concatenate([xb, nb], axis=1)                     # (TN, 2F) bf16
        gb = jnp.dot(cat_xn, rw_ref[...], preferred_element_type=jnp.float32)
        gamma = gb[:, :nfeat]
        beta = gb[:, nfeat:]
        gamma = jnp.where(gamma > 0, gamma, 0.2 * gamma) + 1.0         # LeakyReLU(0.2)+1
        beta = jnp.where(beta > 0, beta, 0.2 * beta)                   # LeakyReLU(0.2)

        output = x_blk + (gamma * r_ref[...] + beta) - neighbor        # transE head
        out_ref[...] = output

        if head:
            neighbor2 = neighbor
        else:
            inv_norm = pl.reciprocal(s + 1.0, approx=True)             # EUP
            neighbor2 = neighbor + output * inv_norm

        # Lane-dense h_k: one MXU call with block-diagonal W2 = blockdiag(W^T, W^T),
        # one full-width store (no masked sub-128-lane column writes).
        cat = jnp.concatenate([x_blk, neighbor2], axis=1).astype(jnp.bfloat16)  # (TN, 2F)
        hk_ref[...] = jnp.dot(cat, w2_ref[...], preferred_element_type=jnp.float32)


def transsage_forward(x, adj, params, *, head=False, tile_n=128, tile_k=256):
    """x: (N, nfeat) f32, adj: (N, N) f32 (non-negative).
    Returns (h_k (N, 2*nhid) f32, output (N, nfeat) f32)."""
    n, nfeat = x.shape
    nhid = params["w"].shape[0]
    assert n % tile_n == 0 and n % tile_k == 0, (n, tile_n, tile_k)

    bf16 = jnp.bfloat16
    # bf16 MXU operands (adj is 0/1 -> exact), f32 kept for elementwise path.
    adj_b = adj.astype(bf16)
    x_b = x.astype(bf16)
    g1t, g2t = params["gamma_1"].T.astype(bf16), params["gamma_2"].T.astype(bf16)
    b1t, b2t = params["beta_1"].T.astype(bf16), params["beta_2"].T.astype(bf16)
    r = params["r"].astype(jnp.float32)
    # Packed Relation weight: [x | nb] @ RW == [x@G1^T + nb@G2^T | x@B1^T + nb@B2^T]
    rw = jnp.concatenate([jnp.concatenate([g1t, b1t], axis=1),
                          jnp.concatenate([g2t, b2t], axis=1)], axis=0)  # (2F, 2F)
    wt = params["w"].T.astype(bf16)                                      # (nfeat, nhid)
    zero = jnp.zeros((nfeat, nhid), bf16)
    w2 = jnp.concatenate([jnp.concatenate([wt, zero], axis=1),
                          jnp.concatenate([zero, wt], axis=1)], axis=0)  # (2F, 2*nhid)

    grid = (n // tile_n, n // tile_k)
    kernel = functools.partial(_transsage_kernel, head=head, nfeat=nfeat)
    full = lambda shape: pl.BlockSpec(shape, lambda i, k: (0, 0))

    # VMEM budget (double-buffered streams + resident weights + scratch), with headroom;
    # clamp under v7x's 64 MiB physical VMEM.
    est = (2 * tile_n * tile_k * 2            # adj tiles (bf16, double-buffered)
           + 2 * tile_k * nfeat * 2           # x contraction tiles (bf16)
           + 2 * tile_n * nfeat * 4           # x row tiles (f32)
           + 2 * (2 * nfeat) * (2 * nfeat) * 2  # packed Relation weight
           + 2 * (2 * nfeat) * (2 * nhid) * 2   # blockdiag projection weight
           + 8 * nfeat * 4                    # r (sublane-padded)
           + 2 * tile_n * 2 * nhid * 4        # h_k out tiles
           + 2 * tile_n * nfeat * 4           # output tiles
           + tile_n * nfeat * 4               # neighbor accumulator
           + tile_n * 128 * 4)                # row-sum accumulator (lane-padded)
    vmem_limit = int(min(max(2 * est, 16 * 1024 * 1024), 48 * 1024 * 1024))

    h_k, output = pl.pallas_call(
        kernel,
        out_shape=(jax.ShapeDtypeStruct((n, 2 * nhid), jnp.float32),
                   jax.ShapeDtypeStruct((n, nfeat), jnp.float32)),
        grid_spec=pltpu.PrefetchScalarGridSpec(
            num_scalar_prefetch=0,
            grid=grid,
            in_specs=[
                pl.BlockSpec((tile_n, tile_k), lambda i, k: (i, k)),   # adj tile (bf16)
                pl.BlockSpec((tile_k, nfeat), lambda i, k: (k, 0)),    # x contraction tile (bf16)
                pl.BlockSpec((tile_n, nfeat), lambda i, k: (i, 0)),    # x row tile (f32)
                full((2 * nfeat, 2 * nfeat)),                          # packed Relation weight
                full((1, nfeat)),                                      # r
                full((2 * nfeat, 2 * nhid)),                           # blockdiag(W^T, W^T)
            ],
            out_specs=[
                pl.BlockSpec((tile_n, 2 * nhid), lambda i, k: (i, 0)),
                pl.BlockSpec((tile_n, nfeat), lambda i, k: (i, 0)),
            ],
            scratch_shapes=[
                pltpu.VMEM((tile_n, nfeat), jnp.float32),              # neighbor accumulator
                pltpu.VMEM((tile_n, 1), jnp.float32),                  # row-sum accumulator
            ],
        ),
        compiler_params=pltpu.CompilerParams(
            dimension_semantics=("parallel", "arbitrary"),
            vmem_limit_bytes=vmem_limit,
        ),
    )(adj_b, x_b, x, rw, r, w2)
    return h_k, output


def transsage_reference(x, adj, params, *, head=False):
    """Pure-JAX f32 reference mirroring the PyTorch forward (ablation=0, ver=1)."""
    l1 = jnp.maximum(jnp.sum(jnp.abs(adj), axis=1, keepdims=True), 1e-12)
    mean = adj / l1
    neighbor = mean @ x
    lrelu = lambda v: jnp.where(v > 0, v, 0.2 * v)
    gamma = lrelu(x @ params["gamma_1"].T + neighbor @ params["gamma_2"].T) + 1.0
    beta = lrelu(x @ params["beta_1"].T + neighbor @ params["beta_2"].T)
    output = x + (gamma * params["r"] + beta) - neighbor
    if not head:
        norm = jnp.sum(adj, axis=1, keepdims=True) + 1.0
        neighbor = neighbor + output / norm
    h_k = jnp.concatenate([x @ params["w"].T, neighbor @ params["w"].T], axis=1)
    return h_k, output


def init_params(key, nfeat, nhid):
    ks = jax.random.split(key, 6)
    u = lambda k, shape, s: jax.random.uniform(k, shape, jnp.float32, -s, s)
    stdv = 1.0 / (nfeat ** 0.5)
    return {
        "gamma_1": u(ks[0], (nfeat, nfeat), stdv),
        "gamma_2": u(ks[1], (nfeat, nfeat), stdv),
        "beta_1":  u(ks[2], (nfeat, nfeat), stdv),
        "beta_2":  u(ks[3], (nfeat, nfeat), stdv),
        "r":       u(ks[4], (1, nfeat), stdv),
        "w":       u(ks[5], (nhid, nfeat), stdv),   # nn.Linear(nfeat, nhid, bias=False)
    }


if __name__ == "__main__":
    N, NFEAT, NHID = 256, 128, 64
    key = jax.random.PRNGKey(0)
    kx, ka, kp = jax.random.split(key, 3)

    x = jax.random.normal(kx, (N, NFEAT), jnp.float32)
    # synthetic dense non-negative adjacency (binarised graph) — bf16-exact 0/1 values
    adj = (jax.random.uniform(ka, (N, N)) < 0.05).astype(jnp.float32)
    params = init_params(kp, NFEAT, NHID)

    # tile_k=128 so the k-accumulation (grid axis 1) path is actually exercised.
    h_k, output = transsage_forward(x, adj, params, head=False, tile_n=128, tile_k=128)
    jax.block_until_ready((h_k, output))

    h_k_ref, output_ref = transsage_reference(x, adj, params, head=False)
    assert h_k.shape == (N, 2 * NHID) and output.shape == (N, NFEAT)
    # bf16 MXU operands (f32 accumulation) -> loosen tolerance vs. the pure-f32 reference.
    assert jnp.allclose(h_k, h_k_ref, atol=1e-1, rtol=1e-1), \
        float(jnp.max(jnp.abs(h_k - h_k_ref)))
    assert jnp.allclose(output, output_ref, atol=1e-1, rtol=1e-1), \
        float(jnp.max(jnp.abs(output - output_ref)))

    print("KERNEL_OK")
</pallas_src>

<mosaic_0001>
module attributes {stable_mosaic.version = 11 : i64} {
  func.func @_transsage_kernel(%arg0: i32, %arg1: i32, %arg2: memref<128x128xbf16, #tpu.memory_space<vmem>>, %arg3: memref<128x128xbf16, #tpu.memory_space<vmem>>, %arg4: memref<128x128xf32, #tpu.memory_space<vmem>>, %arg5: memref<256x256xbf16, #tpu.memory_space<vmem>>, %arg6: memref<1x128xf32, #tpu.memory_space<vmem>>, %arg7: memref<256x128xbf16, #tpu.memory_space<vmem>>, %arg8: memref<128x128xf32, #tpu.memory_space<vmem>>, %arg9: memref<128x128xf32, #tpu.memory_space<vmem>>, %arg10: memref<128x128xf32, #tpu.memory_space<vmem>>, %arg11: memref<128x1xf32, #tpu.memory_space<vmem>>) attributes {dimension_semantics = [#tpu.dimension_semantics<parallel>, #tpu.dimension_semantics<arbitrary>], iteration_bounds = array<i64: 2, 2>, scalar_prefetch = 0 : i64, scratch_operands = 2 : i64, tpu.core_type = #tpu.core_type<tc>, window_params = [{transform_indices = @transform_0, window_bounds = array<i64: 128, 128>}, {transform_indices = @transform_1, window_bounds = array<i64: 128, 128>}, {transform_indices = @transform_2, window_bounds = array<i64: 128, 128>}, {pipeline_mode = #tpu.pipeline_mode<synchronous>, transform_indices = @transform_3, window_bounds = array<i64: 256, 256>}, {pipeline_mode = #tpu.pipeline_mode<synchronous>, transform_indices = @transform_4, window_bounds = array<i64: 1, 128>}, {pipeline_mode = #tpu.pipeline_mode<synchronous>, transform_indices = @transform_5, window_bounds = array<i64: 256, 128>}, {transform_indices = @transform_6, window_bounds = array<i64: 128, 128>}, {transform_indices = @transform_7, window_bounds = array<i64: 128, 128>}]} {
    %c0_i32 = arith.constant 0 : i32
    %0 = arith.cmpi eq, %arg1, %c0_i32 : i32
    %1 = arith.extui %0 : i1 to i32
    %c0_i32_0 = arith.constant 0 : i32
    %2 = arith.cmpi ne, %1, %c0_i32_0 : i32
    scf.if %2 {
      %cst_14 = arith.constant 0.000000e+00 : f32
      %18 = vector.broadcast %cst_14 : f32 to vector<128x128xf32>
      %c0_15 = arith.constant 0 : index
      %c0_16 = arith.constant 0 : index
      %19 = vector.load %arg10[%c0_15, %c0_16] : memref<128x128xf32, #tpu.memory_space<vmem>>, vector<128x128xf32>
      tpu.vector_store %arg10[%c0_15, %c0_16], %18 {strides = array<i32>} : memref<128x128xf32, #tpu.memory_space<vmem>>, vector<128x128xf32>,
      %cst_17 = arith.constant 0.000000e+00 : f32
      %20 = vector.broadcast %cst_17 : f32 to vector<128x1xf32>
      %c0_18 = arith.constant 0 : index
      %c0_19 = arith.constant 0 : index
      %21 = vector.load %arg11[%c0_18, %c0_19] : memref<128x1xf32, #tpu.memory_space<vmem>>, vector<128x1xf32>
      tpu.vector_store %arg11[%c0_18, %c0_19], %20 {strides = array<i32>} : memref<128x1xf32, #tpu.memory_space<vmem>>, vector<128x1xf32>,
    } else {
    }
    %c0 = arith.constant 0 : index
    %c0_1 = arith.constant 0 : index
    %3 = vector.load %arg2[%c0, %c0_1] : memref<128x128xbf16, #tpu.memory_space<vmem>>, vector<128x128xbf16>
    %c0_2 = arith.constant 0 : index
    %c0_3 = arith.constant 0 : index
    %4 = vector.load %arg10[%c0_2, %c0_3] : memref<128x128xf32, #tpu.memory_space<vmem>>, vector<128x128xf32>
    %c0_4 = arith.constant 0 : index
    %c0_5 = arith.constant 0 : index
    %5 = vector.load %arg3[%c0_4, %c0_5] : memref<128x128xbf16, #tpu.memory_space<vmem>>, vector<128x128xbf16>
    %cst = arith.constant dense<0.000000e+00> : vector<128x128xf32>
    %6 = tpu.matmul %3, %5, %cst {dimension_numbers = #tpu.dot_dimension_numbers<[1], [0], [0], [1], [0, 0, 1, 1], [], []>} : vector<128x128xbf16>, vector<128x128xbf16>, vector<128x128xf32> -> vector<128x128xf32>
    %7 = arith.addf %4, %6 : vector<128x128xf32>
    %c0_6 = arith.constant 0 : index
    %c0_7 = arith.constant 0 : index
    %8 = vector.load %arg10[%c0_6, %c0_7] : memref<128x128xf32, #tpu.memory_space<vmem>>, vector<128x128xf32>
    tpu.vector_store %arg10[%c0_6, %c0_7], %7 {strides = array<i32>} : memref<128x128xf32, #tpu.memory_space<vmem>>, vector<128x128xf32>,
    %c0_8 = arith.constant 0 : index
    %c0_9 = arith.constant 0 : index
    %9 = vector.load %arg11[%c0_8, %c0_9] : memref<128x1xf32, #tpu.memory_space<vmem>>, vector<128x1xf32>
    %10 = arith.extf %3 : vector<128x128xbf16> to vector<128x128xf32>
    %cst_10 = arith.constant dense<0.000000e+00> : vector<128xf32>
    %11 = vector.multi_reduction <add>, %10, %cst_10 [1] : vector<128x128xf32> to vector<128xf32>
    %12 = vector.shape_cast %11 : vector<128xf32> to vector<128x1xf32>
    %13 = arith.addf %9, %12 : vector<128x1xf32>
    %c0_11 = arith.constant 0 : index
    %c0_12 = arith.constant 0 : index
    %14 = vector.load %arg11[%c0_11, %c0_12] : memref<128x1xf32, #tpu.memory_space<vmem>>, vector<128x1xf32>
    tpu.vector_store %arg11[%c0_11, %c0_12], %13 {strides = array<i32>} : memref<128x1xf32, #tpu.memory_space<vmem>>, vector<128x1xf32>,
    %c1_i32 = arith.constant 1 : i32
    %15 = arith.cmpi eq, %arg1, %c1_i32 : i32
    %16 = arith.extui %15 : i1 to i32
    %c0_i32_13 = arith.constant 0 : i32
    %17 = arith.cmpi ne, %16, %c0_i32_13 : i32
    scf.if %17 {
      %c0_14 = arith.constant 0 : index
      %c0_15 = arith.constant 0 : index
      %18 = vector.load %arg4[%c0_14, %c0_15] : memref<128x128xf32, #tpu.memory_space<vmem>>, vector<128x128xf32>
      %c0_16 = arith.constant 0 : index
      %c0_17 = arith.constant 0 : index
      %19 = vector.load %arg11[%c0_16, %c0_17] : memref<128x1xf32, #tpu.memory_space<vmem>>, vector<128x1xf32>
      %cst_18 = arith.constant 9.99999996E-13 : f32
      %20 = vector.broadcast %cst_18 : f32 to vector<128x1xf32>
      %21 = arith.maximumf %19, %20 : vector<128x1xf32>
      %22 = tpu.reciprocal %21 {approx = true} : vector<128x1xf32> -> vector<128x1xf32>
      %c0_19 = arith.constant 0 : index
      %c0_20 = arith.constant 0 : index
      %23 = vector.load %arg10[%c0_19, %c0_20] : memref<128x128xf32, #tpu.memory_space<vmem>>, vector<128x128xf32>
      %24 = vector.broadcast %22 : vector<128x1xf32> to vector<128x128xf32>
      %25 = arith.mulf %23, %24 : vector<128x128xf32>
      %26 = arith.truncf %18 : vector<128x128xf32> to vector<128x128xbf16>
      %27 = arith.truncf %25 : vector<128x128xf32> to vector<128x128xbf16>
      %28 = tpu.concatenate %26, %27 in 1 : vector<128x128xbf16>, vector<128x128xbf16> -> vector<128x256xbf16>
      %c0_21 = arith.constant 0 : index
      %c0_22 = arith.constant 0 : index
      %29 = vector.load %arg5[%c0_21, %c0_22] : memref<256x256xbf16, #tpu.memory_space<vmem>>, vector<256x256xbf16>
      %cst_23 = arith.constant dense<0.000000e+00> : vector<128x256xf32>
      %30 = tpu.matmul %28, %29, %cst_23 {dimension_numbers = #tpu.dot_dimension_numbers<[1], [0], [0], [1], [0, 0, 1, 1], [], []>} : vector<128x256xbf16>, vector<256x256xbf16>, vector<128x256xf32> -> vector<128x256xf32>
      %31 = vector.extract_strided_slice %30 {offsets = [0, 0], sizes = [128, 128], strides = [1, 1]} : vector<128x256xf32> to vector<128x128xf32>
      %32 = vector.extract_strided_slice %30 {offsets = [0, 128], sizes = [128, 128], strides = [1, 1]} : vector<128x256xf32> to vector<128x128xf32>
      %cst_24 = arith.constant 0.000000e+00 : f32
      %33 = vector.broadcast %cst_24 : f32 to vector<128x128xf32>
      %34 = arith.cmpf ogt, %31, %33 : vector<128x128xf32>
      %cst_25 = arith.constant 2.000000e-01 : f32
      %35 = vector.broadcast %cst_25 : f32 to vector<128x128xf32>
      %36 = arith.mulf %35, %31 : vector<128x128xf32>
      %37 = arith.select %34, %31, %36 : vector<128x128xi1>, vector<128x128xf32>
      %cst_26 = arith.constant 1.000000e+00 : f32
      %38 = vector.broadcast %cst_26 : f32 to vector<128x128xf32>
      %39 = arith.addf %37, %38 : vector<128x128xf32>
      %cst_27 = arith.constant 0.000000e+00 : f32
      %40 = vector.broadcast %cst_27 : f32 to vector<128x128xf32>
      %41 = arith.cmpf ogt, %32, %40 : vector<128x128xf32>
      %cst_28 = arith.constant 2.000000e-01 : f32
      %42 = vector.broadcast %cst_28 : f32 to vector<128x128xf32>
      %43 = arith.mulf %42, %32 : vector<128x128xf32>
      %44 = arith.select %41, %32, %43 : vector<128x128xi1>, vector<128x128xf32>
      %c0_29 = arith.constant 0 : index
      %c0_30 = arith.constant 0 : index
      %45 = vector.load %arg6[%c0_29, %c0_30] : memref<1x128xf32, #tpu.memory_space<vmem>>, vector<1x128xf32>
      %46 = vector.broadcast %45 : vector<1x128xf32> to vector<128x128xf32>
      %47 = arith.mulf %39, %46 : vector<128x128xf32>
      %48 = arith.addf %47, %44 : vector<128x128xf32>
      %49 = arith.addf %18, %48 : vector<128x128xf32>
      %50 = arith.subf %49, %25 : vector<128x128xf32>
      %c0_31 = arith.constant 0 : index
      %c0_32 = arith.constant 0 : index
      %51 = vector.load %arg9[%c0_31, %c0_32] : memref<128x128xf32, #tpu.memory_space<vmem>>, vector<128x128xf32>
      tpu.vector_store %arg9[%c0_31, %c0_32], %50 {strides = array<i32>} : memref<128x128xf32, #tpu.memory_space<vmem>>, vector<128x128xf32>,
      %cst_33 = arith.constant 1.000000e+00 : f32
      %52 = vector.broadcast %cst_33 : f32 to vector<128x1xf32>
      %53 = arith.addf %19, %52 : vector<128x1xf32>
      %54 = tpu.reciprocal %53 {approx = true} : vector<128x1xf32> -> vector<128x1xf32>
      %55 = vector.broadcast %54 : vector<128x1xf32> to vector<128x128xf32>
      %56 = arith.mulf %50, %55 : vector<128x128xf32>
      %57 = arith.addf %25, %56 : vector<128x128xf32>
      %58 = tpu.concatenate %18, %57 in 1 : vector<128x128xf32>, vector<128x128xf32> -> vector<128x256xf32>
      %59 = arith.truncf %58 : vector<128x256xf32> to vector<128x256xbf16>
      %c0_34 = arith.constant 0 : index
      %c0_35 = arith.constant 0 : index
      %60 = vector.load %arg7[%c0_34, %c0_35] : memref<256x128xbf16, #tpu.memory_space<vmem>>, vector<256x128xbf16>
      %cst_36 = arith.constant dense<0.000000e+00> : vector<128x128xf32>
      %61 = tpu.matmul %59, %60, %cst_36 {dimension_numbers = #tpu.dot_dimension_numbers<[1], [0], [0], [1], [0, 0, 1, 1], [], []>} : vector<128x256xbf16>, vector<256x128xbf16>, vector<128x128xf32> -> vector<128x128xf32>
      %c0_37 = arith.constant 0 : index
      %c0_38 = arith.constant 0 : index
      %62 = vector.load %arg8[%c0_37, %c0_38] : memref<128x128xf32, #tpu.memory_space<vmem>>, vector<128x128xf32>
      tpu.vector_store %arg8[%c0_37, %c0_38], %61 {strides = array<i32>} : memref<128x128xf32, #tpu.memory_space<vmem>>, vector<128x128xf32>,
    } else {
    }
    return
  }
  func.func @transform_0(%arg0: i32, %arg1: i32) -> (i32, i32) {
    %c0_i32 = arith.constant 0 : i32
    return %arg0, %arg1 : i32, i32
  }
  func.func @transform_1(%arg0: i32, %arg1: i32) -> (i32, i32) {
    %c0_i32 = arith.constant 0 : i32
    %c0_i32_0 = arith.constant 0 : i32
    return %arg1, %c0_i32 : i32, i32
  }
  func.func @transform_2(%arg0: i32, %arg1: i32) -> (i32, i32) {
    %c0_i32 = arith.constant 0 : i32
    %c0_i32_0 = arith.constant 0 : i32
    return %arg0, %c0_i32 : i32, i32
  }
  func.func @transform_3(%arg0: i32, %arg1: i32) -> (i32, i32) {
    %c0_i32 = arith.constant 0 : i32
    %c0_i32_0 = arith.constant 0 : i32
    %c0_i32_1 = arith.constant 0 : i32
    return %c0_i32, %c0_i32_0 : i32, i32
  }
  func.func @transform_4(%arg0: i32, %arg1: i32) -> (i32, i32) {
    %c0_i32 = arith.constant 0 : i32
    %c0_i32_0 = arith.constant 0 : i32
    %c0_i32_1 = arith.constant 0 : i32
    return %c0_i32, %c0_i32_0 : i32, i32
  }
  func.func @transform_5(%arg0: i32, %arg1: i32) -> (i32, i32) {
    %c0_i32 = arith.constant 0 : i32
    %c0_i32_0 = arith.constant 0 : i32
    %c0_i32_1 = arith.constant 0 : i32
    return %c0_i32, %c0_i32_0 : i32, i32
  }
  func.func @transform_6(%arg0: i32, %arg1: i32) -> (i32, i32) {
    %c0_i32 = arith.constant 0 : i32
    %c0_i32_0 = arith.constant 0 : i32
    return %arg0, %c0_i32 : i32, i32
  }
  func.func @transform_7(%arg0: i32, %arg1: i32) -> (i32, i32) {
    %c0_i32 = arith.constant 0 : i32
    %c0_i32_0 = arith.constant 0 : i32
    return %arg0, %c0_i32 : i32, i32
  }
}

</mosaic_0001>

<bundles_post_ra>
// kernel: tpu_custom_call.1
= control target key start
LH: loop header
LB: loop body
LE: loop exit
PB: predicated region body
PF: predicated region fallthrough
CT: control target
= control target key end

     0   :  { %s3995_s0 = inlined_call_operand.hbm [shape: bf16[256,256], index: 0, kind: input, shape index: {}]   ;;  %s3996_s1 = inlined_call_operand.hbm [shape: bf16[256,128], index: 1, kind: input, shape index: {}]   ;;  %s3997_s2 = inlined_call_operand.hbm [shape: f32[256,128], index: 2, kind: input, shape index: {}]   ;;  %s3998_s3 = inlined_call_operand.hbm [shape: bf16[256,256], index: 3, kind: input, shape index: {}]   ;;  %s3999_s4 = inlined_call_operand.vmem [shape: f32[1,128], index: 4, kind: input, shape index: {}]   ;;  %s4000_s5 = inlined_call_operand.hbm [shape: bf16[256,128], index: 5, kind: input, shape index: {}]   ;;  %s4001_s6 = inlined_call_operand.hbm [shape: f32[256,128], index: 6, kind: output, shape index: {0}]   ;;  %s4002_s7 = inlined_call_operand.hbm [shape: f32[256,128], index: 7, kind: output, shape index: {1}]  }
   0x1   :  { %4023 = sst [smem:[#allocation30_spill]] %s3995_s0 }
   0x2   :  { %4024 = sst [smem:[#allocation31_spill]] %s3996_s1 }
   0x3   :  { %4025 = sst [smem:[#allocation32_spill]] %s3997_s2 }
   0x4   :  { %4026 = sst [smem:[#allocation33_spill]] %s3998_s3 }
   0x5   :  { %4027 = sst [smem:[#allocation34_spill]] %s3999_s4 }
   0x6   :  { %4028 = sst [smem:[#allocation35_spill]] %s4001_s6 }
   0x7   :  { %4029 = sst [smem:[#allocation36_spill]] %s4002_s7 }
   0x8   :  { %13 = vsyncpa [#allocation5], 0 }
   0x9   :  { %15 = vsyncpa [#allocation5 + $0x1], 0 }
   0xa   :  { %16 = vsyncpa [#allocation8], 0 }
   0xb   :  { %18 = vsyncpa [#allocation8 + $0x1], 0 }
   0xc   :  { %19 = vsyncpa [#allocation11], 0 }
   0xd   :  { %20 = vsyncpa [#allocation6], 0 }
   0xe   :  { %22 = vsyncpa [#allocation6 + $0x1], 0 }
   0xf   :  { %23 = vsyncpa [#allocation15], 0 }
  0x10   :  { %25 = vsyncpa [#allocation15 + $0x1], 0  ;;  %s3100_s24 = smov 0   ;;  %s3102_s25 = smov 0  }
  0x11   :  { %s3104_s26 = smov 0   ;;  %s3106_s27 = smov 0  }
  0x12   :  { %s3108_s28 = smov 0   ;;  %s3110_s29 = smov 0  }
  0x13   :  { %s3112_s30 = smov 0   ;;  %s3114_s8 = smov 0  }
  0x14   :  { %s3116_s9 = smov 0   ;;  %s3118_s10 = smov 0  }
  0x15   :  { %s3120_s11 = smov 0   ;;  %s3122_s12 = smov 0  }
  0x16   :  { %s3124_s13 = smov 0   ;;  %s3126_s14 = smov 0  }
  0x17 LB: > { %4030 = sst [smem:[#allocation22_spill]] %s3007_s28  ;;  %s3171_s15 = sadd.s32 4294967295, %s3043_s14   ;;  %s3043_s14 = sphi %s3126_s14, %s31_s14   ;;  %s3039_s13 = sphi %s3124_s13, %s4098_s13   ;;  %s3035_s12 = sphi %s3122_s12, %s4097_s12   ;;  %s3031_s11 = sphi %s3120_s11, %s4096_s11   ;;  %s3027_s10 = sphi %s3118_s10, %s4095_s10   ;;  %s3023_s9 = sphi %s3116_s9, %s4094_s9   ;;  %s3019_s8 = sphi %s3114_s8, %s4093_s8   ;;  %s3015_s30 = sphi %s3112_s30, %s4092_s30   ;;  %s3011_s29 = sphi %s3110_s29, %s4086_s29   ;;  %s3007_s28 = sphi %s3108_s28, %s4085_s28   ;;  %s3003_s27 = sphi %s3106_s27, %s4084_s27   ;;  %s2999_s26 = sphi %s3104_s26, %s4091_s26   ;;  %s2995_s25 = sphi %s3102_s25, %s4090_s25   ;;  %s2991_s24 = sphi %s3100_s24, %s4089_s24  }
  0x18   : > { %4031 = sst [smem:[#allocation23_spill]] %s3011_s29  ;;  %p2153_p0 = scmp.ge.s32.totalorder %s3043_s14, 1 }
  0x19   : > { %4032 = sst [smem:[#allocation24_spill]] %s3027_s10  ;;  %p4005_p1 = scmp.eq.s32.totalorder %s3171_s15, 0 }
  0x1a   : > { %4033 = sst [smem:[#allocation25_spill]] %s3031_s11  ;;  %p243_p3 = scmp.lt.s32.totalorder %s3043_s14, 5 }
  0x1b   : > { %s3045_s17 = smov [#allocation10]   ;;  %s4036_s3 = sld [smem:[#allocation33_spill]] }
  0x1c   : > { %p3177_p4 = pnand %p2153_p0, %p243_p3  ;;  %s255_s18 = sshll.u32 %s3045_s17, 4  ;;  %s256_s18 = int_to_ptr.vmem [resolvable:$true] %s255_s18 }
  0x1e   : > { %s4034_s16 = scalar_select %p3177_p4, 1, 0 }
  0x1f   : > { %p2401_p5 = pneg %p3177_p4 }
  0x21   : > { %p3185_p6 = pnand %p2401_p5, %p4005_p1  ;;  %s2707_s22 = scalar_lea.hbm %s4036_s3, 4096 }
  0x22   : > { %p2708_p7 = scmp.ne.s32.totalorder %s4036_s3, %s2707_s22  ;;  %p2714_p11 = scmp.lt.u32.totalorder %s2707_s22, %s4036_s3 }
  0x23   : > { %p4019_p8 = pneg %p3185_p6 }
  0x25   : > { %p2710_p9 = pnand %p4019_p8, %p2708_p7 }
  0x27   : > { %p2711_p10 = pneg %p2710_p9 }
  0x29   : > { %p2716_p12 = pnand %p2714_p11, %p2711_p10 }
  0x2b   : > { %2719 = shalt.err (!%p2716_p12)
}
  0x2c   : > { %s2720_s20 = scalar_lea.vmem %s256_s18, 4096  ;;  %p2728_p5 = scmp.lt.s32.totalorder %s256_s18, %s256_s18 }
  0x2d   : > { %p2721_p13 = scmp.ne.s32.totalorder %s256_s18, %s2720_s20  ;;  %p2729_p2 = scmp.lt.s32.totalorder %s2720_s20, %s2720_s20 }
  0x2f   : > { %p2723_p0 = pnand %p2721_p13, %p4019_p8  ;;  %p2730_p1 = por %p2729_p2, %p2728_p5 }
  0x31   : > { %p2724_p3 = pneg %p2723_p0 }
  0x33   : > { %p2731_p4 = pnand %p2730_p1, %p2724_p3 }
  0x35   : > { %2734 = shalt.err (!%p2731_p4)
}
  0x36   : > { %s4009_s7 = smov 128   ;;  %s4008_s6 = smov 8  }
  0x37   : > { %2404 = dma.hbm_to_vmem [thread:$0]  (!%p3185_p6), %s4036_s3, 4096, %s256_s18, [#allocation11], %s4009_s7, %s4009_s7, %s4008_s6  }
  0x38   : > { %s40_s23 = sadd.s32 1, %s3035_s12  ;;  %s43_s17 = sadd.s32 1, %s3039_s13 }
  0x39   : > { %p41_p1 = scmp.ge.s32.totalorder %s40_s23, 2  ;;  %p4018_p2 = scmp.eq.s32.totalorder %s3043_s14, 0 }
  0x3a   : > { %s78_s20 = sadd.s32 1, %s3011_s29  ;;  %p85_p4 = scmp.ne.s32.totalorder %s3011_s29, %s3007_s28 }
  0x3b   : > { %s4100_s23 = smov (%p41_p1, %s40_s23), 0  ;;  %s4102_s17 = smov (!%p41_p1, %s43_s17), %s3039_s13 }
  0x3c   : > { %4037 = sst [smem:[#allocation26_spill]] %s4100_s23  ;;  %s48_s11 = ssub.s32 %s3035_s12, %s4100_s23 }
  0x3d   : > { %p3227_p7 = por %p85_p4, %p4018_p2  ;;  %p45_p9 = scmp.ge.s32.totalorder %s4102_s17, 2 }
  0x3e   : > { %p76_p10 = scmp.eq.s32.totalorder %s48_s11, 0  ;;  %p91_p11 = scmp.ne.s32.totalorder %s3007_s28, %s3003_s27 }
  0x3f   : > { %s4104_s17 = smov (%p45_p9, %s4102_s17), 0  ;;  %p4041_p12 = scmp.eq.s32.totalorder %s3171_s15, 0 }
  0x40   : > { %4039 = sst [smem:[#allocation27_spill]] %s4104_s17  ;;  %s3240_s22 = ssub.s32 %s3039_s13, %s4104_s17 }
  0x41   : > { %s3236_s21 = scalar_select %p76_p10, %s3011_s29, %s78_s20  }
  0x42   : > { %p3244_p13 = por %p91_p11, %p4041_p12  ;;  %s49_s7 = sor.u32 %s48_s11, %s3240_s22 }
  0x43   : > { %4040 = sst [smem:[#allocation28_spill]] %s3236_s21  ;;  %p3250_p3 = scmp.eq.s32.totalorder %s49_s7, 0 }
  0x44   : > { %s4042_s6 = scalar_select %p3244_p13, 1, 0 }
  0x45   : > { %s4044_s27 = scalar_select %p3250_p3, 1, 0 }
  0x46   : > { %4043 = sst [smem:[#allocation29_spill]] %s4042_s6  ;;  %p4017_p5 = scmp.lt.s32.totalorder %s3043_s14, 4 }
  0x47   : > { %s308_s3 = sand.u32 1, %s3043_s14   ;;  %s310_s23 = sand.u32 1, %s3011_s29  }
  0x48   : > { %s2161_s20 = sshll.u32 %s310_s23, 6  ;;  %s2251_s21 = sshll.u32 %s3035_s12, 10 }
  0x49   : > { %s4045_s1 = sld [smem:[#allocation31_spill]]  ;;  %s312_s6 = scalar_lea.vmem [#allocation7], %s2161_s20 }
  0x4a   : > { %s319_s11 = sshll.u32 %s312_s6, 4  ;;  %p3267_p1 = pnand %p4017_p5, %p3227_p7  ;;  %s3271_s11 = int_to_ptr.vmem [resolvable:$true] %s319_s11 }
  0x4b   : > { %s3048_s23 = smov [#allocation12]   ;;  %s3275_s17 = scalar_lea.sflag [#allocation8], %s308_s3 }
  0x4c   : > { %s3273_s4 = sshll.u32 %s3048_s23, 4  ;;  %p2737_p9 = pneg %p3267_p1  ;;  %s272_s4 = int_to_ptr.vmem [resolvable:$true] %s3273_s4 }
  0x4f   : > { %s3261_s10 = scalar_lea.hbm %s4045_s1, %s2251_s21  ;;  %s2740_s20 = scalar_lea.hbm %s4045_s1, 2048 }
  0x50   : > { %s2735_s21 = scalar_lea.hbm %s3261_s10, 1024  ;;  %p2741_p11 = scmp.lt.u32.totalorder %s3261_s10, %s4045_s1 }
  0x51   : > { %p2736_p4 = scmp.ne.s32.totalorder %s3261_s10, %s2735_s21  ;;  %p2742_p12 = scmp.lt.u32.totalorder %s2740_s20, %s2735_s21 }
  0x52   : > { %p2744_p5 = scmp.lt.u32.totalorder %s2735_s21, %s3261_s10 }
  0x53   : > { %p2738_p10 = pnand %p2737_p9, %p2736_p4  ;;  %p2743_p0 = por %p2742_p12, %p2741_p11 }
  0x55   : > { %p2739_p7 = pneg %p2738_p10  ;;  %p2745_p2 = por %p2744_p5, %p2743_p0 }
  0x57   : > { %p2746_p8 = pnand %p2745_p2, %p2739_p7 }
  0x59   : > { %2749 = shalt.err (!%p2746_p8)
}
  0x5a   : > { %s2750_s3 = scalar_lea.vmem %s3271_s11, 1024  ;;  %s3049_s23 = smov [#allocation7]  }
  0x5b   : > { %p2751_p4 = scmp.ne.s32.totalorder %s3271_s11, %s2750_s3  ;;  %s2755_s6 = sshll.u32 %s3049_s23, 4  ;;  %s2756_s6 = int_to_ptr.vmem [resolvable:$false] %s2755_s6 }
  0x5c   : > { %s2757_s28 = scalar_lea.vmem %s2756_s6, 2048  ;;  %p2758_p3 = scmp.lt.s32.totalorder %s3271_s11, %s2756_s6 }
  0x5d   : > { %p2753_p10 = pnand %p2751_p4, %p2737_p9  ;;  %p2759_p11 = scmp.lt.s32.totalorder %s2757_s28, %s2750_s3 }
  0x5f   : > { %p2754_p13 = pneg %p2753_p10  ;;  %p2760_p12 = por %p2759_p11, %p2758_p3 }
  0x61   : > { %p2761_p0 = pnand %p2760_p12, %p2754_p13 }
  0x63   : > { %2764 = shalt.err (!%p2761_p0)
}
  0x64   : > { %s3050_s29 = smov 64   ;;  %s3051_s21 = smov 4  }
  0x65   : > { %2414 = dma.hbm_to_vmem [thread:$0]  (!%p3267_p1), %s3261_s10, 1024, %s3271_s11, %s3275_s17, %s3050_s29, %s3050_s29, %s3051_s21  }
  0x66   : > { %s2765_s3 = scalar_lea.hbm %s4000_s5, 2048  ;;  %p4047_p2 = pneg %p3185_p6 }
  0x67   : > { %p2766_p8 = scmp.ne.s32.totalorder %s4000_s5, %s2765_s3  ;;  %p2772_p5 = scmp.lt.u32.totalorder %s2765_s3, %s4000_s5 }
  0x69   : > { %p2768_p13 = pnand %p2766_p8, %p4047_p2 }
  0x6b   : > { %p2769_p3 = pneg %p2768_p13 }
  0x6d   : > { %p2774_p9 = pnand %p2772_p5, %p2769_p3 }
  0x6f   : > { %2777 = shalt.err (!%p2774_p9)
}
  0x70   : > { %s2778_s10 = scalar_lea.vmem %s272_s4, 2048  ;;  %p4048_p7 = pmov %p4047_p2 }
  0x71   : > { %p2779_p1 = scmp.ne.s32.totalorder %s272_s4, %s2778_s10  ;;  %p2786_p11 = scmp.lt.s32.totalorder %s272_s4, %s272_s4 }
  0x72   : > { %p2787_p12 = scmp.lt.s32.totalorder %s2778_s10, %s2778_s10 }
  0x73   : > { %p2781_p4 = pnand %p2779_p1, %p4048_p7 }
  0x74   : > { %p2788_p0 = por %p2787_p12, %p2786_p11 }
  0x75   : > { %p2782_p10 = pneg %p2781_p4 }
  0x77   : > { %p2789_p2 = pnand %p2788_p0, %p2782_p10 }
  0x79   : > { %2792 = shalt.err (!%p2789_p2)
}
  0x7a   : > { %2407 = dma.hbm_to_vmem [thread:$0]  (!%p3185_p6), %s4000_s5, 2048, %s272_s4, [#allocation11], %s3050_s29, %s3050_s29, %s3051_s21  }
  0x7b   : > { %s52_s19 = sadd.s32 1, %s3023_s9  ;;  %p4049_p8 = scmp.ne.s32.totalorder %s4044_s27, 0 }
  0x7c   : > { %p59_p13 = scmp.ne.s32.totalorder %s3023_s9, %s3019_s8  ;;  %p65_p3 = scmp.ne.s32.totalorder %s3019_s8, %s3015_s30 }
  0x7d   : > { %s3334_s7 = scalar_select %p4049_p8, %s3023_s9, %s52_s19  }
  0x7e   : > { %s285_s18 = sand.u32 1, %s3023_s9   ;;  %s2250_s20 = sshll.u32 %s3039_s13, 5 }
  0x7f   : > { %p4050_p5 = scmp.eq.s32.totalorder %s3043_s14, 0  ;;  %p4051_p1 = scmp.eq.s32.totalorder %s3171_s15, 0 }
  0x80   : > { %s2157_s23 = sshll.u32 %s285_s18, 6  ;;  %s295_s6 = sadd.s32 %s3035_s12, %s2250_s20 }
  0x81   : > { %p61_p9 = por %p4050_p5, %p59_p13  ;;  %p3346_p7 = por %p4051_p1, %p65_p3 }
  0x82   : > { %s2160_s28 = sshll.u32 %s295_s6, 6  ;;  %s289_s4 = scalar_lea.vmem [#allocation4], %s2157_s23 }
  0x83   : > { %s298_s10 = sshll.u32 %s289_s4, 4  ;;  %s4053_s0 = sld [smem:[#allocation30_spill]]  ;;  %s3356_s10 = int_to_ptr.vmem [resolvable:$true] %s298_s10 }
  0x84   : > { %p4054_p6 = scmp.lt.s32.totalorder %s3043_s14, 4  ;;  %s3364_s19 = scalar_lea.sflag [#allocation5], %s285_s18 }
  0x86   : > { %p3360_p4 = pnand %p4054_p6, %p61_p9 }
  0x88   : > { %p2795_p11 = pneg %p3360_p4 }
  0x89   : > { %s3354_s11 = scalar_lea.hbm %s4053_s0, %s2160_s28  ;;  %s2798_s28 = scalar_lea.hbm %s4053_s0, 4096 }
  0x8a   : > { %s2793_s20 = scalar_lea.hbm %s3354_s11, 1024  ;;  %p2799_p2 = scmp.lt.u32.totalorder %s3354_s11, %s4053_s0 }
  0x8b   : > { %p2794_p10 = scmp.ne.s32.totalorder %s3354_s11, %s2793_s20  ;;  %p2800_p8 = scmp.lt.u32.totalorder %s2798_s28, %s2793_s20 }
  0x8c   : > { %p2802_p3 = scmp.lt.u32.totalorder %s2793_s20, %s3354_s11 }
  0x8d   : > { %p2796_p12 = pnand %p2795_p11, %p2794_p10  ;;  %p2801_p13 = por %p2800_p8, %p2799_p2 }
  0x8f   : > { %p2797_p0 = pneg %p2796_p12  ;;  %p2803_p5 = por %p2802_p3, %p2801_p13 }
  0x91   : > { %p2804_p9 = pnand %p2803_p5, %p2797_p0 }
  0x93   : > { %2807 = shalt.err (!%p2804_p9)
}
  0x94   : > { %s2808_s18 = scalar_lea.vmem %s3356_s10, 1024  ;;  %s3052_s27 = smov [#allocation4]  }
  0x95   : > { %p2809_p1 = scmp.ne.s32.totalorder %s3356_s10, %s2808_s18  ;;  %s2813_s23 = sshll.u32 %s3052_s27, 4  ;;  %s2814_s23 = int_to_ptr.vmem [resolvable:$false] %s2813_s23 }
  0x96   : > { %s2815_s6 = scalar_lea.vmem %s2814_s23, 2048  ;;  %p2816_p12 = scmp.lt.s32.totalorder %s3356_s10, %s2814_s23 }
  0x97   : > { %p2811_p6 = pnand %p2809_p1, %p2795_p11  ;;  %p2817_p2 = scmp.lt.s32.totalorder %s2815_s6, %s2808_s18 }
  0x99   : > { %p2812_p10 = pneg %p2811_p6  ;;  %p2818_p8 = por %p2817_p2, %p2816_p12 }
  0x9b   : > { %p2819_p13 = pnand %p2818_p8, %p2812_p10 }
  0x9d   : > { %2822 = shalt.err (!%p2819_p13)
}
  0x9e   : > { %s4056_s20 = smov 128   ;;  %s2152_s30 = sadd.s32 4294967294, %s3043_s14  }
  0x9f   : > { %2411 = dma.hbm_to_vmem [thread:$0]  (!%p3360_p4), %s3354_s11, 1024, %s3356_s10, %s3364_s19, %s4056_s20, %s3050_s29, %s3051_s21  }
  0xa0   : > { %s104_s28 = sadd.s32 1, %s2999_s26  ;;  %p4057_p11 = scmp.eq.s32.totalorder %s3240_s22, 0 }
  0xa1   : > { %p111_p0 = scmp.ne.s32.totalorder %s2999_s26, %s2995_s25  ;;  %p117_p3 = scmp.ne.s32.totalorder %s2995_s25, %s2991_s24 }
  0xa2   : > { %s3400_s4 = scalar_select %p4057_p11, %s2999_s26, %s104_s28  }
  0xa3   : > { %p210_p5 = scmp.eq.s32.totalorder %s2152_s30, 3  ;;  %s331_s1 = sand.u32 1, %s2999_s26  }
  0xa4   : > { %p4058_p9 = scmp.eq.s32.totalorder %s3043_s14, 0  ;;  %p4059_p6 = scmp.eq.s32.totalorder %s3171_s15, 0 }
  0xa5   : > { %p4061_p12 = scmp.eq.s32.totalorder %s3171_s15, 3  ;;  %p3421_p4 = por %p210_p5, %p117_p3 }
  0xa6   : > { %p113_p1 = por %p111_p0, %p4058_p9  ;;  %p3411_p10 = por %p117_p3, %p4059_p6 }
  0xa7   : > { %p3417_p2 = por %p4061_p12, %p111_p0  ;;  %s2164_s21 = sshll.u32 %s331_s1, 7 }
  0xa8   : > { %s4060_s18 = scalar_select %p3411_p10, 1, 0 }
  0xa9   : > { %s4062_s29 = scalar_select %p3417_p2, 1, 0 }
  0xaa   : > { %s4063_s22 = scalar_select %p3421_p4, 1, 0 }
  0xab   : > { %s2252_s10 = sshll.u32 %s3039_s13, 11  ;;  %s4064_s2 = sld [smem:[#allocation32_spill]] }
  0xac   : > { %s333_s23 = scalar_lea.vmem [#allocation9], %s2164_s21  ;;  %p4065_p8 = scmp.lt.s32.totalorder %s3043_s14, 4 }
  0xad   : > { %s340_s6 = sshll.u32 %s333_s23, 4  ;;  %s3437_s6 = int_to_ptr.vmem [resolvable:$true] %s340_s6 }
  0xae   : > { %p3433_p13 = pnand %p4065_p8, %p113_p1 }
  0xb0   : > { %p2825_p0 = pneg %p3433_p13 }
  0xb1   : > { %s3429_s27 = scalar_lea.hbm %s4064_s2, %s2252_s10  ;;  %s2828_s10 = scalar_lea.hbm %s4064_s2, 4096 }
  0xb2   : > { %s2823_s28 = scalar_lea.hbm %s3429_s27, 2048  ;;  %p2829_p9 = scmp.lt.u32.totalorder %s3429_s27, %s4064_s2 }
  0xb3   : > { %p2824_p11 = scmp.ne.s32.totalorder %s3429_s27, %s2823_s28  ;;  %p2830_p1 = scmp.lt.u32.totalorder %s2828_s10, %s2823_s28 }
  0xb4   : > { %p2832_p12 = scmp.lt.u32.totalorder %s2823_s28, %s3429_s27 }
  0xb5   : > { %p2826_p3 = pnand %p2825_p0, %p2824_p11  ;;  %p2831_p6 = por %p2830_p1, %p2829_p9 }
  0xb7   : > { %p2827_p5 = pneg %p2826_p3  ;;  %p2833_p8 = por %p2832_p12, %p2831_p6 }
  0xb9   : > { %p2834_p4 = pnand %p2833_p8, %p2827_p5 }
  0xbb   : > { %2837 = shalt.err (!%p2834_p4)
}
  0xbc   : > { %s2838_s23 = scalar_lea.vmem %s3437_s6, 2048  ;;  %s3053_s1 = smov [#allocation9]  }
  0xbd   : > { %p2839_p11 = scmp.ne.s32.totalorder %s3437_s6, %s2838_s23  ;;  %s2843_s21 = sshll.u32 %s3053_s1, 4  ;;  %s2844_s21 = int_to_ptr.vmem [resolvable:$false] %s2843_s21 }
  0xbe   : > { %s2845_s11 = scalar_lea.vmem %s2844_s21, 4096  ;;  %p2846_p10 = scmp.lt.s32.totalorder %s3437_s6, %s2844_s21 }
  0xbf   : > { %p2841_p3 = pnand %p2839_p11, %p2825_p0  ;;  %p2847_p9 = scmp.lt.s32.totalorder %s2845_s11, %s2838_s23 }
  0xc1   : > { %p2842_p2 = pneg %p2841_p3  ;;  %p2848_p1 = por %p2847_p9, %p2846_p10 }
  0xc3   : > { %p2849_p6 = pnand %p2848_p1, %p2842_p2 }
  0xc5   : > { %2852 = shalt.err (!%p2849_p6)
}
  0xc6   : > { %s4067_s28 = smov 8   ;;  %p4068_p4 = scmp.ne.s32.totalorder %s4034_s16, 0 }
  0xc7   : > { %2417 = dma.hbm_to_vmem [thread:$0]  (!%p3433_p13), %s3429_s27, 2048, %s3437_s6, %s3275_s17, %s4056_s20, %s4056_s20, %s4067_s28  }
  0xc8   : > { %352 = sbr.rel (%p4068_p4) target bundleno = 1198 (0x4ae), region = 44  ;;  %s354_s10 = sand.u32 (!%p4068_p4), 1, %s3019_s8  }
  0xc9   : > { %s2168_s19 = sshll.u32 (!%p4068_p4), %s354_s10, 6  ;;  %s355_s23 = scalar_lea.sflag (!%p4068_p4), [#allocation5], %s354_s10 }
  0xca   : > { %s3471_s1 = scalar_lea.vmem (!%p4068_p4), [#allocation4], %s2168_s19 }
  0xcf   : > { %2966 = dma.done.wait (%p3346_p7), %s355_s23, 1024  }
  0xd0   : > { %2968 = vsyncadd (%p3346_p7), %s355_s23, 4294966272  ;;  %s4069_s30 = sld [smem:[#allocation22_spill]]  ;;  %s4070_s21 = sld [smem:[#allocation29_spill]] }
  0xd1   : > { %s363_s11 = sand.u32 1, %s3171_s15  }
  0xd2   : > { %s364_s16 = scalar_lea.sflag [#allocation8], %s363_s11 }
  0xd6   : > { %s365_s17 = sand.u32 1, %s4069_s30   ;;  %p4071_p10 = scmp.ne.s32.totalorder %s4070_s21, 0 }
  0xd7   : > { %s2169_s20 = sshll.u32 %s365_s17, 6 }
  0xd8   : > { %s3479_s27 = scalar_lea.vmem [#allocation7], %s2169_s20 }
  0xd9   : > { %2970 = dma.done.wait (%p4071_p10), %s364_s16, 1024  }
  0xda   : > { %2972 = vsyncadd (%p4071_p10), %s364_s16, 4294966272  ;;  %s3486_s6 = sand.u32 1, %s2995_s25   ;;  %p4072_p7 = scmp.ne.s32.totalorder %s4060_s18, 0 }
  0xdb   : > { %s2170_s3 = sshll.u32 %s3486_s6, 7 }
  0xdc   : > { %s3489_s28 = scalar_lea.vmem [#allocation9], %s2170_s3 }
  0xdd   : > { %2974 = dma.done.wait (%p4072_p7), %s364_s16, 2048  }
  0xde   : > { %2976 = vsyncadd (%p4072_p7), %s364_s16, 4294965248  ;;  %p4073_p2 = scmp.eq.s32.totalorder %s3171_s15, 0 }
  0xe0   : > { %2978 = dma.done.wait (%p4073_p2), [#allocation11], 6144   ;;  %p4074_p13 = pmov %p4073_p2 }
  0xe1   : > { %s3499_s10 = scalar_lea.vmem [#allocation13], %s2170_s3  ;;  %s3501_s19 = scalar_lea.vmem [#allocation14], %s2170_s3 }
  0xe2   : > { %2980 = vsyncadd (%p4074_p13), [#allocation11], 4294961152  ;;  %s4075_s23 = sld [smem:[#allocation24_spill]] }
  0xe8   : > { %p2175_p0 = scmp.ne.s32.totalorder %s4075_s23, 0 }
  0xe9   : > { %vm456_vm0 = vcmask (!%p2175_p0), 7168   ;;  %v3054_v0 = vmov (!%p2175_p0), 0.0  }
  0xea   : > { %439 = sbr.rel (%p2175_p0) target bundleno = 250 (0xfa), region = 68  ;;  %440 = vst [vmem:[#allocation2] sm:$0xff] (!%p2175_p0), %v3054_v0  ;;  %441 = vst [vmem:[#allocation2 + $0x8] sm:$0xff] (!%p2175_p0), %v3054_v0 }
  0xeb   : > { %442 = vst [vmem:[#allocation2 + $0x10] sm:$0xff] (!%p2175_p0), %v3054_v0  ;;  %443 = vst [vmem:[#allocation2 + $0x18] sm:$0xff] (!%p2175_p0), %v3054_v0 }
  0xec   : > { %444 = vst [vmem:[#allocation2 + $0x20] sm:$0xff] (!%p2175_p0), %v3054_v0  ;;  %445 = vst [vmem:[#allocation2 + $0x28] sm:$0xff] (!%p2175_p0), %v3054_v0 }
  0xed   : > { %446 = vst [vmem:[#allocation2 + $0x30] sm:$0xff] (!%p2175_p0), %v3054_v0  ;;  %447 = vst [vmem:[#allocation2 + $0x38] sm:$0xff] (!%p2175_p0), %v3054_v0 }
  0xee   : > { %448 = vst [vmem:[#allocation2 + $0x40] sm:$0xff] (!%p2175_p0), %v3054_v0  ;;  %449 = vst [vmem:[#allocation2 + $0x48] sm:$0xff] (!%p2175_p0), %v3054_v0 }
  0xef   : > { %450 = vst [vmem:[#allocation2 + $0x50] sm:$0xff] (!%p2175_p0), %v3054_v0  ;;  %451 = vst [vmem:[#allocation2 + $0x58] sm:$0xff] (!%p2175_p0), %v3054_v0 }
  0xf0   : > { %452 = vst [vmem:[#allocation2 + $0x60] sm:$0xff] (!%p2175_p0), %v3054_v0  ;;  %453 = vst [vmem:[#allocation2 + $0x68] sm:$0xff] (!%p2175_p0), %v3054_v0 }
  0xf1   : > { %454 = vst [vmem:[#allocation2 + $0x70] sm:$0xff] %v3054_v0  ;;  %455 = vst [vmem:[#allocation2 + $0x78] sm:$0xff] %v3054_v0 }
  0xf2   : > { %457 = vst.msk [vmem:[#allocation3] sm:$0xff] %vm456_vm0, %v3054_v0  ;;  %458 = vst.msk [vmem:[#allocation3 + $0x8] sm:$0xff] %vm456_vm0, %v3054_v0 }
  0xf3   : > { %459 = vst.msk [vmem:[#allocation3 + $0x10] sm:$0xff] %vm456_vm0, %v3054_v0  ;;  %460 = vst.msk [vmem:[#allocation3 + $0x18] sm:$0xff] %vm456_vm0, %v3054_v0 }
  0xf4   : > { %461 = vst.msk [vmem:[#allocation3 + $0x20] sm:$0xff] %vm456_vm0, %v3054_v0  ;;  %462 = vst.msk [vmem:[#allocation3 + $0x28] sm:$0xff] %vm456_vm0, %v3054_v0 }
  0xf5   : > { %463 = vst.msk [vmem:[#allocation3 + $0x30] sm:$0xff] %vm456_vm0, %v3054_v0  ;;  %464 = vst.msk [vmem:[#allocation3 + $0x38] sm:$0xff] %vm456_vm0, %v3054_v0 }
  0xf6   : > { %465 = vst.msk [vmem:[#allocation3 + $0x40] sm:$0xff] %vm456_vm0, %v3054_v0  ;;  %466 = vst.msk [vmem:[#allocation3 + $0x48] sm:$0xff] %vm456_vm0, %v3054_v0 }
  0xf7   : > { %467 = vst.msk [vmem:[#allocation3 + $0x50] sm:$0xff] %vm456_vm0, %v3054_v0  ;;  %468 = vst.msk [vmem:[#allocation3 + $0x58] sm:$0xff] %vm456_vm0, %v3054_v0 }
  0xf8   : > { %469 = vst.msk [vmem:[#allocation3 + $0x60] sm:$0xff] %vm456_vm0, %v3054_v0  ;;  %470 = vst.msk [vmem:[#allocation3 + $0x68] sm:$0xff] %vm456_vm0, %v3054_v0 }
  0xf9   : > { %471 = vst.msk [vmem:[#allocation3 + $0x70] sm:$0xff] %vm456_vm0, %v3054_v0  ;;  %472 = vst.msk [vmem:[#allocation3 + $0x78] sm:$0xff] %vm456_vm0, %v3054_v0 }
  0xfa PF: > { %v2553_v1 = vld [vmem:[%s3479_s27] sm:$0xff]   ;;  %v2554_v2 = vld [vmem:[%s3479_s27 + $0x8] sm:$0xff]   ;;  %v2555_v3 = vld [vmem:[%s3479_s27 + $0x10] sm:$0xff]   ;;  %vm826_vm1 = vcmask 7168   ;;  %s4076_s15 = sld [smem:[#allocation24_spill]] }
  0xfb   : > { %2335 = vmatprep.subr.bf16.mxu0 %v2553_v1  ;;  %2367 = vmatprep.subr.bf16.mxu1 %v2553_v1  ;;  %v2556_v4 = vld [vmem:[%s3479_s27 + $0x18] sm:$0xff]   ;;  %v473_v5 = vld [vmem:[%s3471_s1] sm:$0xff]   ;;  %v475_v7 = vld [vmem:[%s3471_s1 + $0x8] sm:$0xff]  }
  0xfc   : > { %2336 = vmatpush3.bf16.msra.mxu0 %v2553_v1  ;;  %2375 = vmatpush3.bf16.msra.mxu1 %v2553_v1  ;;  %v481_v6 = vld [vmem:[%s3471_s1 + $0x20] sm:$0xff]   ;;  %v764_v8 = vunpack.c.l.bf16 %v475_v7  ;;  %v762_v9 = vunpack.c.l.bf16 %v473_v5  ;;  %v765_v11 = vunpack.c.h.bf16 %v475_v7  ;;  %v763_v12 = vunpack.c.h.bf16 %v473_v5  ;;  %v2558_v13 = vld [vmem:[%s3479_s27 + $0x28] sm:$0xff]   ;;  %v477_v14 = vld [vmem:[%s3471_s1 + $0x10] sm:$0xff]  }
  0xfd   : > { %2337 = vmatprep.subr.bf16.mxu0 %v2554_v2  ;;  %2368 = vmatprep.subr.bf16.mxu1 %v2554_v2  ;;  %v2557_v10 = vld [vmem:[%s3479_s27 + $0x20] sm:$0xff]   ;;  %v767_v15 = vunpack.c.h.bf16 %v477_v14  ;;  %v766_v16 = vunpack.c.l.bf16 %v477_v14  ;;  %v2559_v17 = vld [vmem:[%s3479_s27 + $0x30] sm:$0xff]   ;;  %v479_v18 = vld [vmem:[%s3471_s1 + $0x18] sm:$0xff]   ;;  %v771_v22 = vunpack.c.h.bf16 %v481_v6  ;;  %v770_v23 = vunpack.c.l.bf16 %v481_v6 }
  0xfe   : > { %2351 = vmatprep.mubr.bf16.mxu0 %v473_v5  ;;  %2359 = vmatprep.mubr.bf16.mxu1 %v481_v6  ;;  %v769_v19 = vunpack.c.h.bf16 %v479_v18  ;;  %v768_v20 = vunpack.c.l.bf16 %v479_v18  ;;  %v2560_v21 = vld [vmem:[%s3479_s27 + $0x38] sm:$0xff]   ;;  %v483_v24 = vld [vmem:[%s3471_s1 + $0x28] sm:$0xff]   ;;  %v485_v25 = vld [vmem:[%s3471_s1 + $0x30] sm:$0xff]  }
  0xff   : > { %782 = vadd.xlane.f32.xlu1 %v764_v8  ;;  %778 = vadd.xlane.f32.xlu0 %v762_v9  ;;  %v773_v26 = vunpack.c.h.bf16 %v483_v24  ;;  %v772_v27 = vunpack.c.l.bf16 %v483_v24  ;;  %v487_v28 = vld [vmem:[%s3471_s1 + $0x38] sm:$0xff]   ;;  %v775_v29 = vunpack.c.h.bf16 %v485_v25  ;;  %v774_v30 = vunpack.c.l.bf16 %v485_v25  ;;  %v748_v33 = vld [vmem:[#allocation3 + $0x10] sm:$0xff]  ;;  %v746_v34 = vld [vmem:[#allocation3] sm:$0xff] }
 0x100   : > { %2338 = vmatpush3.bf16.msra.mxu0 %v2554_v2  ;;  %2376 = vmatpush3.bf16.msra.mxu1 %v2554_v2  ;;  %v777_v31 = vunpack.c.h.bf16 %v487_v28  ;;  %v776_v32 = vunpack.c.l.bf16 %v487_v28  ;;  %v749_v39 = vld [vmem:[#allocation3 + $0x18] sm:$0xff]  ;;  %v747_v40 = vld [vmem:[#allocation3 + $0x8] sm:$0xff]  ;;  %v750_v46 = vld [vmem:[#allocation3 + $0x20] sm:$0xff]  ;;  %p2192_p5 = scmp.ne.s32.totalorder %s4076_s15, 1 }
 0x101   : > { %2339 = vmatprep.subr.bf16.mxu0 %v2555_v3  ;;  %2369 = vmatprep.subr.bf16.mxu1 %v2555_v3  ;;  %v751_v45 = vld [vmem:[#allocation3 + $0x28] sm:$0xff]  ;;  %v753_v51 = vld [vmem:[#allocation3 + $0x38] sm:$0xff]  ;;  %v752_v52 = vld [vmem:[#allocation3 + $0x30] sm:$0xff]  ;;  %s4077_s30 = sld [smem:[#allocation34_spill]] (!%p2192_p5) }
 0x102   : > { %v755_v57 = vld [vmem:[#allocation3 + $0x48] sm:$0xff]  ;;  %v754_v58 = vld [vmem:[#allocation3 + $0x40] sm:$0xff]  ;;  %v757_v63 = vld [vmem:[#allocation3 + $0x58] sm:$0xff] }
 0x103   : > { %784 = vadd.xlane.f32.xlu1 %v765_v11  ;;  %780 = vadd.xlane.f32.xlu0 %v763_v12  ;;  %v756_v0 = vld [vmem:[#allocation3 + $0x50] sm:$0xff]  ;;  %v759_v5 = vld [vmem:[#allocation3 + $0x68] sm:$0xff]  ;;  %v758_v6 = vld [vmem:[#allocation3 + $0x60] sm:$0xff] }
 0x104   : > { %2340 = vmatpush3.bf16.msra.mxu0 %v2555_v3  ;;  %2377 = vmatpush3.bf16.msra.mxu1 %v2555_v3  ;;  %v761_v11 = vld [vmem:[#allocation3 + $0x78] sm:$0xff]  ;;  %v760_v12 = vld [vmem:[#allocation3 + $0x70] sm:$0xff] }
 0x105   : > { %2341 = vmatprep.subr.bf16.mxu0 %v2556_v4  ;;  %2370 = vmatprep.subr.bf16.mxu1 %v2556_v4 }
 0x107   : > { %788 = vadd.xlane.f32.xlu1 %v767_v15  ;;  %786 = vadd.xlane.f32.xlu0 %v766_v16 }
 0x108   : > { %2342 = vmatpush3.bf16.msra.mxu0 %v2556_v4  ;;  %2378 = vmatpush3.bf16.msra.mxu1 %v2556_v4 }
 0x109   : > { %2343 = vmatprep.subr.bf16.mxu0 %v2557_v10  ;;  %2371 = vmatprep.subr.bf16.mxu1 %v2557_v10 }
 0x10b   : > { %792 = vadd.xlane.f32.xlu1 %v769_v19  ;;  %790 = vadd.xlane.f32.xlu0 %v768_v20  ;;  %v489_v19 = vld [vmem:[#allocation2] sm:$0xff] }
 0x10c   : > { %2344 = vmatpush3.bf16.msra.mxu0 %v2557_v10  ;;  %2379 = vmatpush3.bf16.msra.mxu1 %v2557_v10  ;;  %v497_v20 = vld [vmem:[#allocation2 + $0x40] sm:$0xff] }
 0x10d   : > { %2345 = vmatprep.subr.bf16.mxu0 %v2558_v13  ;;  %2372 = vmatprep.subr.bf16.mxu1 %v2558_v13 }
 0x10f   : > { %796 = vadd.xlane.f32.xlu1 %v771_v22  ;;  %794 = vadd.xlane.f32.xlu0 %v770_v23  ;;  %v492_v23 = vld [vmem:[#allocation2 + $0x18] sm:$0xff] }
 0x110   : > { %2346 = vmatpush3.bf16.msra.mxu0 %v2558_v13  ;;  %2380 = vmatpush3.bf16.msra.mxu1 %v2558_v13 }
 0x111   : > { %2347 = vmatprep.subr.bf16.mxu0 %v2559_v17  ;;  %2373 = vmatprep.subr.bf16.mxu1 %v2559_v17 }
 0x113   : > { %800 = vadd.xlane.f32.xlu1 %v773_v26  ;;  %798 = vadd.xlane.f32.xlu0 %v772_v27 }
 0x114   : > { %2348 = vmatpush3.bf16.msra.mxu0 %v2559_v17  ;;  %2381 = vmatpush3.bf16.msra.mxu1 %v2559_v17  ;;  %v491_v17 = vld [vmem:[#allocation2 + $0x10] sm:$0xff] }
 0x115   : > { %2349 = vmatprep.subr.bf16.mxu0 %v2560_v21  ;;  %2374 = vmatprep.subr.bf16.mxu1 %v2560_v21 }
 0x117   : > { %804 = vadd.xlane.f32.xlu1 %v775_v29  ;;  %802 = vadd.xlane.f32.xlu0 %v774_v30  ;;  %v498_v29 = vld [vmem:[#allocation2 + $0x48] sm:$0xff] }
 0x118   : > { %2350 = vmatpush3.bf16.msra.mxu0 %v2560_v21  ;;  %2382 = vmatpush3.bf16.msra.mxu1 %v2560_v21  ;;  %v490_v30 = vld [vmem:[#allocation2 + $0x8] sm:$0xff] }
 0x11b   : > { %2352 = vmatmul.mubr.bf16.vlgmr.msra.gmra.mrb[0].mxu0 %v475_v7  ;;  %2360 = vmatmul.mubr.bf16.vlgmr.msra.gmra.mrb[0].mxu1 %v483_v24  ;;  %v500_v24 = vld [vmem:[#allocation2 + $0x58] sm:$0xff] }
 0x11c   : > { %2355 = vmatprep.mubr.bf16.mxu0 %v477_v14  ;;  %2363 = vmatprep.mubr.bf16.mxu1 %v485_v25 }
 0x11d   : > { %808 = vadd.xlane.f32.xlu1 %v777_v31  ;;  %806 = vadd.xlane.f32.xlu0 %v776_v32 }
 0x123   : > { %2356 = vmatmul.mubr.bf16.gmra.mrb[4].mxu0 %v479_v18  ;;  %2364 = vmatmul.mubr.bf16.gmra.mrb[4].mxu1 %v487_v28  ;;  %v499_v18 = vld [vmem:[#allocation2 + $0x50] sm:$0xff] }
 0x18c   : > { %v783_v35 = vpop.xlane.xlu1 %782  ;;  %v779_v36 = vpop.xlane.xlu0 %778 }
 0x18d   : > { %v812_v37 = vadd.f32 %v783_v35, %v748_v33  ;;  %v810_v38 = vadd.f32 %v779_v36, %v746_v34 }
 0x18f   : > { %829 = vst.msk [vmem:[#allocation3 + $0x10] sm:$0xff] %vm826_vm1, %v812_v37  ;;  %827 = vst.msk [vmem:[#allocation3] sm:$0xff] %vm826_vm1, %v810_v38 }
 0x190   : > { %v785_v41 = vpop.xlane.xlu1 %784  ;;  %v781_v42 = vpop.xlane.xlu0 %780 }
 0x191   : > { %v813_v43 = vadd.f32 %v785_v41, %v749_v39  ;;  %v811_v44 = vadd.f32 %v781_v42, %v747_v40  ;;  %v495_v41 = vld [vmem:[#allocation2 + $0x30] sm:$0xff] }
 0x192   : > { %v503_v42 = vld [vmem:[#allocation2 + $0x70] sm:$0xff] }
 0x193   : > { %830 = vst.msk [vmem:[#allocation3 + $0x18] sm:$0xff] %vm826_vm1, %v813_v43  ;;  %828 = vst.msk [vmem:[#allocation3 + $0x8] sm:$0xff] %vm826_vm1, %v811_v44  ;;  %v493_v43 = vld [vmem:[#allocation2 + $0x20] sm:$0xff] }
 0x194   : > { %v789_v47 = vpop.xlane.xlu1 %788  ;;  %v787_v48 = vpop.xlane.xlu0 %786  ;;  %v501_v44 = vld [vmem:[#allocation2 + $0x60] sm:$0xff] }
 0x195   : > { %v815_v49 = vadd.f32 %v789_v47, %v751_v45  ;;  %v814_v50 = vadd.f32 %v787_v48, %v750_v46  ;;  %v496_v47 = vld [vmem:[#allocation2 + $0x38] sm:$0xff] }
 0x196   : > { %v504_v48 = vld [vmem:[#allocation2 + $0x78] sm:$0xff] }
 0x197   : > { %832 = vst.msk [vmem:[#allocation3 + $0x28] sm:$0xff] %vm826_vm1, %v815_v49  ;;  %831 = vst.msk [vmem:[#allocation3 + $0x20] sm:$0xff] %vm826_vm1, %v814_v50 }
 0x198   : > { %v793_v53 = vpop.xlane.xlu1 %792  ;;  %v791_v54 = vpop.xlane.xlu0 %790 }
 0x199   : > { %v817_v55 = vadd.f32 %v793_v53, %v753_v51  ;;  %v816_v56 = vadd.f32 %v791_v54, %v752_v52  ;;  %v502_v53 = vld [vmem:[#allocation2 + $0x68] sm:$0xff] }
 0x19a   : > { %v494_v54 = vld [vmem:[#allocation2 + $0x28] sm:$0xff] }
 0x19b   : > { %834 = vst.msk [vmem:[#allocation3 + $0x38] sm:$0xff] %vm826_vm1, %v817_v55  ;;  %833 = vst.msk [vmem:[#allocation3 + $0x30] sm:$0xff] %vm826_vm1, %v816_v56 }
 0x19c   : > { %v797_v59 = vpop.xlane.xlu1 %796  ;;  %v795_v60 = vpop.xlane.xlu0 %794 }
 0x19d   : > { %v819_v61 = vadd.f32 %v797_v59, %v755_v57  ;;  %v818_v62 = vadd.f32 %v795_v60, %v754_v58 }
 0x19f   : > { %836 = vst.msk [vmem:[#allocation3 + $0x48] sm:$0xff] %vm826_vm1, %v819_v61  ;;  %835 = vst.msk [vmem:[#allocation3 + $0x40] sm:$0xff] %vm826_vm1, %v818_v62 }
 0x1a0   : > { %v801_v1 = vpop.xlane.xlu1 %800  ;;  %v799_v2 = vpop.xlane.xlu0 %798 }
 0x1a1   : > { %v821_v3 = vadd.f32 %v801_v1, %v757_v63  ;;  %v820_v4 = vadd.f32 %v799_v2, %v756_v0  ;;  %v3553_v1 = vld [vmem:[#allocation3 + $0x10] sm:$0xff] (!%p2192_p5)  ;;  %v3555_v2 = vld [vmem:[#allocation3] sm:$0xff] (!%p2192_p5) }
 0x1a3   : > { %838 = vst.msk [vmem:[#allocation3 + $0x58] sm:$0xff] %vm826_vm1, %v821_v3  ;;  %837 = vst.msk [vmem:[#allocation3 + $0x50] sm:$0xff] %vm826_vm1, %v820_v4  ;;  %v3557_v3 = vld [vmem:[#allocation3 + $0x18] sm:$0xff] (!%p2192_p5)  ;;  %v3055_v4 = vmov (!%p2192_p5), 0  }
 0x1a4   : > { %v805_v7 = vpop.xlane.xlu1 %804  ;;  %v803_v8 = vpop.xlane.xlu0 %802  ;;  %2578 = vset.pattern.permute.xlu1 (!%p2192_p5), %v3055_v4  ;;  %2577 = vset.pattern.permute.xlu0 (!%p2192_p5), %v3055_v4  ;;  %v2600_v4 = vld [vmem:[#allocation10 + $0x74] ss:$8 sps:$4 sm:$0xff] (!%p2192_p5)  }
 0x1a5   : > { %v823_v9 = vadd.f32 %v805_v7, %v759_v5  ;;  %v822_v10 = vadd.f32 %v803_v8, %v758_v6  ;;  %v881_v5 = vmax.f32 (!%p2192_p5), %v3553_v1, 1e-12  ;;  %v879_v6 = vmax.f32 (!%p2192_p5), %v3555_v2, 1e-12  ;;  %v3561_v7 = vld [vmem:[#allocation3 + $0x8] sm:$0xff] (!%p2192_p5) }
 0x1a6   : > { %v3563_v8 = vld [vmem:[#allocation3 + $0x28] sm:$0xff] (!%p2192_p5) }
 0x1a7   : > { %840 = vst.msk [vmem:[#allocation3 + $0x68] sm:$0xff] %vm826_vm1, %v823_v9  ;;  %839 = vst.msk [vmem:[#allocation3 + $0x60] sm:$0xff] %vm826_vm1, %v822_v10  ;;  %2643 = vrcp.f32 (!%p2192_p5), %v881_v5  ;;  %v882_v9 = vmax.f32 (!%p2192_p5), %v3557_v3, 1e-12  ;;  %v880_v10 = vmax.f32 (!%p2192_p5), %v3561_v7, 1e-12 }
 0x1a8   : > { %2645 = vrcp.f32 (!%p2192_p5), %v879_v6 }
 0x1a9   : > { %2647 = vrcp.f32 (!%p2192_p5), %v882_v9 }
 0x1aa   : > { %v809_v13 = vpop.xlane.xlu1 %808  ;;  %v807_v14 = vpop.xlane.xlu0 %806  ;;  %2649 = vrcp.f32 (!%p2192_p5), %v880_v10 }
 0x1ab   : > { %v825_v15 = vadd.f32 %v809_v13, %v761_v11  ;;  %v824_v16 = vadd.f32 %v807_v14, %v760_v12  ;;  %v3567_v11 = vld [vmem:[#allocation3 + $0x20] sm:$0xff] (!%p2192_p5)  ;;  %v884_v12 = vmax.f32 (!%p2192_p5), %v3563_v8, 1e-12  ;;  %v3570_v13 = vld [vmem:[#allocation3 + $0x38] sm:$0xff] (!%p2192_p5) }
 0x1ac   : > { %v883_v14 = vmax.f32 (!%p2192_p5), %v3567_v11, 1e-12  ;;  %v1547_v5 = vadd.f32 (!%p2192_p5), 1.0, %v3567_v11  ;;  %v2605_v11 = vld [vmem:[#allocation10 + $0x80] ss:$8 sps:$4 sm:$0xff] (!%p2192_p5)  }
 0x1ad   : > { %842 = vst.msk [vmem:[#allocation3 + $0x78] sm:$0xff] %vm826_vm1, %v825_v15  ;;  %841 = vst.msk [vmem:[#allocation3 + $0x70] sm:$0xff] %vm826_vm1, %v824_v16  ;;  %v3573_v15 = vld [vmem:[#allocation3 + $0x30] sm:$0xff] (!%p2192_p5)  ;;  %2651 = vrcp.f32 (!%p2192_p5), %v884_v12  ;;  %v886_v16 = vmax.f32 (!%p2192_p5), %v3570_v13, 1e-12 }
 0x1ae   : > { %2653 = vrcp.f32 (!%p2192_p5), %v883_v14  ;;  %v2602_v12 = vld [vmem:[#allocation10 + $0x70] ss:$8 sps:$4 sm:$0xff] (!%p2192_p5)   ;;  %v2603_v14 = vld [vmem:[#allocation10 + $0x84] ss:$8 sps:$4 sm:$0xff] (!%p2192_p5)  }
 0x1af   : > { %2655 = vrcp.f32 (!%p2192_p5), %v886_v16 }
 0x1ee   : > { %v2353_v21 = vpop.f32.mrb[0].mxu0  ;;  %v2361_v22 = vpop.f32.mrb[0].mxu1 }
 0x1ef   : > { %v716_v25 = vadd.f32 %v2353_v21, %v491_v17  ;;  %v724_v26 = vadd.f32 %v2361_v22, %v499_v18  ;;  %v651_v27 = vpop.f32.mrb[1].mxu0  ;;  %v683_v28 = vpop.f32.mrb[1].mxu1  ;;  %v3576_v17 = vld [vmem:[#allocation3 + $0x48] sm:$0xff] (!%p2192_p5)  ;;  %v885_v18 = vmax.f32 (!%p2192_p5), %v3573_v15, 1e-12 }
 0x1f0   : > { %v714_v31 = vadd.f32 %v651_v27, %v489_v19  ;;  %v722_v32 = vadd.f32 %v683_v28, %v497_v20  ;;  %v2354_v33 = vpop.f32.mrb[2].mxu0  ;;  %v2362_v34 = vpop.f32.mrb[2].mxu1  ;;  %v3579_v19 = vld [vmem:[#allocation3 + $0x40] sm:$0xff] (!%p2192_p5)  ;;  %v2582_v22 = vld [vmem:[#allocation10 + $0x14] ss:$8 sps:$4 sm:$0xff] (!%p2192_p5)   ;;  %v1552_v9 = vadd.f32 (!%p2192_p5), 1.0, %v3576_v17 }
 0x1f1   : > { %732 = vst [vmem:[#allocation2 + $0x10] sm:$0xff] %v716_v25  ;;  %740 = vst [vmem:[#allocation2 + $0x50] sm:$0xff] %v724_v26  ;;  %v717_v35 = vadd.f32 %v2354_v33, %v492_v23  ;;  %v725_v36 = vadd.f32 %v2362_v34, %v500_v24  ;;  %v686_v37 = vpop.f32.mrb[3].mxu1  ;;  %v654_v38 = vpop.f32.mrb[3].mxu0  ;;  %v2579_v20 = vld [vmem:[#allocation10 + $0x4] ss:$8 sps:$4 sm:$0xff] (!%p2192_p5)   ;;  %2657 = vrcp.f32 (!%p2192_p5), %v885_v18 }
 0x1f2   : > { %730 = vst [vmem:[#allocation2] sm:$0xff] %v714_v31  ;;  %738 = vst [vmem:[#allocation2 + $0x40] sm:$0xff] %v722_v32  ;;  %v723_v39 = vadd.f32 %v686_v37, %v498_v29  ;;  %v715_v40 = vadd.f32 %v654_v38, %v490_v30  ;;  %v2581_v21 = vld [vmem:[#allocation10] ss:$8 sps:$4 sm:$0xff] (!%p2192_p5)   ;;  %v2644_v23 = vpop.eup (!%p2192_p5), %2643  ;;  %v888_v24 = vmax.f32 (!%p2192_p5), %v3576_v17, 1e-12  ;;  %1231 = vmatprep.subr.bf16.mxu0 (!%p2192_p5), %v2579_v20 }
 0x1f3   : > { %733 = vst [vmem:[#allocation2 + $0x18] sm:$0xff] %v717_v35  ;;  %741 = vst [vmem:[#allocation2 + $0x58] sm:$0xff] %v725_v36  ;;  %939 = vperm.xlu1 (!%p2192_p5), %2578, %v2644_v23   ;;  %v3582_v25 = vld [vmem:[#allocation3 + $0x58] sm:$0xff] (!%p2192_p5)  ;;  %1232 = vmatpush1.bf16.msra.mxu0 (!%p2192_p5), %v2581_v21  ;;  %v2646_v27 = vpop.eup (!%p2192_p5), %2645  ;;  %v887_v28 = vmax.f32 (!%p2192_p5), %v3579_v19, 1e-12  ;;  %v3585_v30 = vld [vmem:[#allocation3 + $0x50] sm:$0xff] (!%p2192_p5) }
 0x1f4   : > { %739 = vst [vmem:[#allocation2 + $0x48] sm:$0xff] %v723_v39  ;;  %731 = vst [vmem:[#allocation2 + $0x8] sm:$0xff] %v715_v40  ;;  %v2584_v26 = vld [vmem:[#allocation10 + $0x10] ss:$8 sps:$4 sm:$0xff] (!%p2192_p5)   ;;  %1233 = vmatprep.subr.bf16.mxu0 (!%p2192_p5), %v2582_v22  ;;  %v2585_v29 = vld [vmem:[#allocation10 + $0x24] ss:$8 sps:$4 sm:$0xff] (!%p2192_p5)   ;;  %929 = vperm.xlu0 (!%p2192_p5), %2577, %v2646_v27   ;;  %v2648_v31 = vpop.eup (!%p2192_p5), %2647  ;;  %2659 = vrcp.f32 (!%p2192_p5), %v888_v24 }
 0x1f5   : > { %v890_v32 = vmax.f32 (!%p2192_p5), %v3582_v25, 1e-12  ;;  %v2650_v33 = vpop.eup (!%p2192_p5), %2649  ;;  %v3588_v34 = vld [vmem:[#allocation3 + $0x68] sm:$0xff] (!%p2192_p5)  ;;  %2661 = vrcp.f32 (!%p2192_p5), %v887_v28  ;;  %v889_v37 = vmax.f32 (!%p2192_p5), %v3585_v30, 1e-12  ;;  %v3591_v39 = vld [vmem:[#allocation3 + $0x60] sm:$0xff] (!%p2192_p5) }
 0x1f6   : > { %v2357_v45 = vpop.f32.mrb[4].mxu0  ;;  %v2365_v46 = vpop.f32.mrb[4].mxu1  ;;  %846 = sbr.rel (%p2192_p5) target bundleno = 1146 (0x47a), region = 72  ;;  %v2587_v35 = vld [vmem:[#allocation10 + $0x20] ss:$8 sps:$4 sm:$0xff] (!%p2192_p5)   ;;  %v1551_v10 = vadd.f32 (!%p2192_p5), 1.0, %v3579_v19 }
 0x1f7   : > { %v720_v49 = vadd.f32 %v2357_v45, %v495_v41  ;;  %v728_v50 = vadd.f32 %v2365_v46, %v503_v42  ;;  %v667_v51 = vpop.f32.mrb[5].mxu0  ;;  %v699_v52 = vpop.f32.mrb[5].mxu1  ;;  %944 = vperm.xlu1 (!%p2192_p5), %2578, %v2648_v31   ;;  %1234 = vmatpush1.bf16.msra.mxu0 (!%p2192_p5), %v2584_v26  ;;  %v2588_v38 = vld [vmem:[#allocation10 + $0x34] ss:$8 sps:$4 sm:$0xff] (!%p2192_p5)   ;;  %2663 = vrcp.f32 (!%p2192_p5), %v890_v32  ;;  %v892_v41 = vmax.f32 (!%p2192_p5), %v3588_v34, 1e-12 }
 0x1f8   : > { %v718_v55 = vadd.f32 %v667_v51, %v493_v43  ;;  %v726_v56 = vadd.f32 %v699_v52, %v501_v44  ;;  %v2358_v57 = vpop.f32.mrb[6].mxu0  ;;  %v2366_v58 = vpop.f32.mrb[6].mxu1  ;;  %1235 = vmatprep.subr.bf16.mxu0 (!%p2192_p5), %v2585_v29  ;;  %934 = vperm.xlu0 (!%p2192_p5), %2577, %v2650_v33   ;;  %v3594_v42 = vld [vmem:[#allocation3 + $0x78] sm:$0xff] (!%p2192_p5)  ;;  %2665 = vrcp.f32 (!%p2192_p5), %v889_v37  ;;  %v891_v45 = vmax.f32 (!%p2192_p5), %v3591_v39, 1e-12 }
 0x1f9   : > { %736 = vst [vmem:[#allocation2 + $0x30] sm:$0xff] %v720_v49  ;;  %744 = vst [vmem:[#allocation2 + $0x70] sm:$0xff] %v728_v50  ;;  %v721_v59 = vadd.f32 %v2358_v57, %v496_v47  ;;  %v729_v60 = vadd.f32 %v2366_v58, %v504_v48  ;;  %v702_v61 = vpop.f32.mrb[7].mxu1  ;;  %v670_v62 = vpop.f32.mrb[7].mxu0  ;;  %v2590_v43 = vld [vmem:[#allocation10 + $0x30] ss:$8 sps:$4 sm:$0xff] (!%p2192_p5)   ;;  %2667 = vrcp.f32 (!%p2192_p5), %v892_v41 }
 0x1fa   : > { %734 = vst [vmem:[#allocation2 + $0x20] sm:$0xff] %v718_v55  ;;  %742 = vst [vmem:[#allocation2 + $0x60] sm:$0xff] %v726_v56  ;;  %v727_v63 = vadd.f32 %v702_v61, %v502_v53  ;;  %v719_v0 = vadd.f32 %v670_v62, %v494_v54  ;;  %v2652_v36 = vpop.eup (!%p2192_p5), %2651  ;;  %v2591_v46 = vld [vmem:[#allocation10 + $0x44] ss:$8 sps:$4 sm:$0xff] (!%p2192_p5)   ;;  %v3597_v47 = vld [vmem:[#allocation3 + $0x70] sm:$0xff] (!%p2192_p5)  ;;  %2669 = vrcp.f32 (!%p2192_p5), %v891_v45  ;;  %v1544_v55 = vadd.f32 (!%p2192_p5), 1.0, %v3561_v7 }
 0x1fb   : > { %737 = vst [vmem:[#allocation2 + $0x38] sm:$0xff] %v721_v59  ;;  %745 = vst [vmem:[#allocation2 + $0x78] sm:$0xff] %v729_v60  ;;  %v2654_v40 = vpop.eup (!%p2192_p5), %2653  ;;  %954 = vperm.xlu1 (!%p2192_p5), %2578, %v2652_v36   ;;  %1236 = vmatpush1.bf16.msra.mxu0 (!%p2192_p5), %v2587_v35  ;;  %v894_v49 = vmax.f32 (!%p2192_p5), %v3594_v42, 1e-12  ;;  %v2593_v50 = vld [vmem:[#allocation10 + $0x40] ss:$8 sps:$4 sm:$0xff] (!%p2192_p5)  }
 0x1fc   : > { %743 = vst [vmem:[#allocation2 + $0x68] sm:$0xff] %v727_v63  ;;  %735 = vst [vmem:[#allocation2 + $0x28] sm:$0xff] %v719_v0  ;;  %v2656_v44 = vpop.eup (!%p2192_p5), %2655  ;;  %1237 = vmatprep.subr.bf16.mxu0 (!%p2192_p5), %v2588_v38  ;;  %949 = vperm.xlu0 (!%p2192_p5), %2577, %v2654_v40   ;;  %v893_v52 = vmax.f32 (!%p2192_p5), %v3597_v47, 1e-12  ;;  %v2594_v53 = vld [vmem:[#allocation10 + $0x54] ss:$8 sps:$4 sm:$0xff] (!%p2192_p5)  }
 0x1fd   : > { %v2658_v48 = vpop.eup %2657  ;;  %2671 = vrcp.f32 %v894_v49  ;;  %v2596_v56 = vld [vmem:[#allocation10 + $0x50] ss:$8 sps:$4 sm:$0xff]   ;;  %v1543_v58 = vadd.f32 1.0, %v3555_v2  ;;  %v2597_v59 = vld [vmem:[#allocation10 + $0x64] ss:$8 sps:$4 sm:$0xff]   ;;  %v1546_v61 = vadd.f32 1.0, %v3557_v3 }
 0x1fe   : > { %v2660_v51 = vpop.eup %2659  ;;  %2673 = vrcp.f32 %v893_v52  ;;  %v2599_v62 = vld [vmem:[#allocation10 + $0x60] ss:$8 sps:$4 sm:$0xff]   ;;  %v1545_v0 = vadd.f32 1.0, %v3553_v1  ;;  %v1548_v2 = vadd.f32 1.0, %v3563_v8  ;;  %v1550_v7 = vadd.f32 1.0, %v3570_v13 }
 0x1ff   : > { %964 = vperm.xlu1 %2578, %v2656_v44   ;;  %1238 = vmatpush1.bf16.msra.mxu0 %v2590_v43  ;;  %v2662_v54 = vpop.eup %2661  ;;  %2675 = vrcp.f32 %v1544_v55  ;;  %v1549_v3 = vadd.f32 1.0, %v3573_v15  ;;  %v1554_v1 = vadd.f32 1.0, %v3582_v25  ;;  %v2606_v13 = vld [vmem:[#allocation10 + $0x94] ss:$8 sps:$4 sm:$0xff]   ;;  %v2608_v18 = vld [vmem:[#allocation10 + $0x90] ss:$8 sps:$4 sm:$0xff]  }
 0x200   : > { %1239 = vmatprep.subr.bf16.mxu0 %v2591_v46  ;;  %959 = vperm.xlu0 %2577, %v2658_v48   ;;  %2677 = vrcp.f32 %v1543_v58  ;;  %v2609_v19 = vld [vmem:[#allocation10 + $0xa4] ss:$8 sps:$4 sm:$0xff]   ;;  %v2611_v22 = vld [vmem:[#allocation10 + $0xa0] ss:$8 sps:$4 sm:$0xff]   ;;  %v1553_v24 = vadd.f32 1.0, %v3585_v30  ;;  %v1556_v27 = vadd.f32 1.0, %v3588_v34 }
 0x201   : > { %v2664_v57 = vpop.eup %2663  ;;  %2679 = vrcp.f32 %v1546_v61  ;;  %v2612_v25 = vld [vmem:[#allocation10 + $0xb4] ss:$8 sps:$4 sm:$0xff]   ;;  %v2614_v28 = vld [vmem:[#allocation10 + $0xb0] ss:$8 sps:$4 sm:$0xff]   ;;  %v1555_v31 = vadd.f32 1.0, %v3591_v39  ;;  %v1558_v30 = vadd.f32 1.0, %v3594_v42 }
 0x202   : > { %v2666_v60 = vpop.eup %2665  ;;  %2681 = vrcp.f32 %v1545_v0  ;;  %v2615_v32 = vld [vmem:[#allocation10 + $0xc4] ss:$8 sps:$4 sm:$0xff]   ;;  %v2617_v35 = vld [vmem:[#allocation10 + $0xc0] ss:$8 sps:$4 sm:$0xff]   ;;  %v1557_v34 = vadd.f32 1.0, %v3597_v47  ;;  %v914_v58 = vld [vmem:[#allocation2 + $0x18] sm:$0xff] }
 0x203   : > { %974 = vperm.xlu1 %2578, %v2660_v51   ;;  %1240 = vmatpush1.bf16.msra.mxu0 %v2593_v50  ;;  %v2668_v63 = vpop.eup %2667  ;;  %2683 = vrcp.f32 %v1548_v2  ;;  %v2618_v37 = vld [vmem:[#allocation10 + $0xd4] ss:$8 sps:$4 sm:$0xff]   ;;  %v2620_v39 = vld [vmem:[#allocation10 + $0xd0] ss:$8 sps:$4 sm:$0xff]   ;;  %v2621_v41 = vld [vmem:[#allocation10 + $0xe4] ss:$8 sps:$4 sm:$0xff]  }
 0x204   : > { %1241 = vmatprep.subr.bf16.mxu0 %v2594_v53  ;;  %969 = vperm.xlu0 %2577, %v2662_v54   ;;  %v2670_v6 = vpop.eup %2669  ;;  %2685 = vrcp.f32 %v1547_v5  ;;  %v2623_v43 = vld [vmem:[#allocation10 + $0xe0] ss:$8 sps:$4 sm:$0xff]   ;;  %v2624_v45 = vld [vmem:[#allocation10 + $0xf4] ss:$8 sps:$4 sm:$0xff]   ;;  %v2626_v47 = vld [vmem:[#allocation10 + $0xf0] ss:$8 sps:$4 sm:$0xff]  }
 0x205   : > { %2687 = vrcp.f32 %v1550_v7  ;;  %v2627_v50 = vld [vmem:[#allocation12 + $0x40] sm:$0xff]   ;;  %v2629_v52 = vld [vmem:[#allocation12 + $0x48] sm:$0xff]   ;;  %v2631_v54 = vld [vmem:[#allocation12 + $0x50] sm:$0xff]  }
 0x206   : > { %2689 = vrcp.f32 %v1549_v3  ;;  %v2628_v51 = vld [vmem:[#allocation12] sm:$0xff]   ;;  %2271 = vmatprep.subr.bf16.mxu1 %v2627_v50  ;;  %v2630_v53 = vld [vmem:[#allocation12 + $0x8] sm:$0xff]  }
 0x207   : > { %984 = vperm.xlu1 %2578, %v2664_v57   ;;  %1242 = vmatpush1.bf16.msra.mxu0 %v2596_v56  ;;  %v2672_v16 = vpop.eup %2671  ;;  %2691 = vrcp.f32 %v1552_v9  ;;  %v913_v56 = vld [vmem:[#allocation2 + $0x10] sm:$0xff]  ;;  %v912_v61 = vld [vmem:[#allocation2 + $0x8] sm:$0xff]  ;;  %v3622_v0 = vld [vmem:[%s3489_s28] sm:$0xff] }
 0x208   : > { %1243 = vmatprep.subr.bf16.mxu0 %v2597_v59  ;;  %979 = vperm.xlu0 %2577, %v2666_v60   ;;  %v2674_v8 = vpop.eup %2673  ;;  %2693 = vrcp.f32 %v1551_v10  ;;  %v911_v59 = vld [vmem:[#allocation2] sm:$0xff]  ;;  %v916_v10 = vld [vmem:[#allocation2 + $0x28] sm:$0xff] }
 0x209   : > { %v2676_v15 = vpop.eup %2675  ;;  %2695 = vrcp.f32 %v1554_v1  ;;  %2272 = vmatpush3.bf16.msra.mxu1 %v2628_v51  ;;  %v923_v50 = vld [vmem:[#allocation2 + $0x60] sm:$0xff] }
 0x20a   : > { %v2678_v17 = vpop.eup %2677  ;;  %2697 = vrcp.f32 %v1553_v24  ;;  %2273 = vmatprep.subr.bf16.mxu1 %v2629_v52  ;;  %v3709_v52 = vld [vmem:[%s3489_s28 + $0x50] sm:$0xff] }
 0x20b   : > { %994 = vperm.xlu1 %2578, %v2668_v63   ;;  %1244 = vmatpush1.bf16.msra.mxu0 %v2599_v62  ;;  %v2680_v20 = vpop.eup %2679  ;;  %2699 = vrcp.f32 %v1556_v27 }
 0x20c   : > { %1245 = vmatprep.subr.bf16.mxu0 %v2600_v4  ;;  %989 = vperm.xlu0 %2577, %v2670_v6   ;;  %v2682_v21 = vpop.eup %2681  ;;  %2701 = vrcp.f32 %v1555_v31  ;;  %v3625_v4 = vld [vmem:[%s3489_s28 + $0x8] sm:$0xff]  ;;  %v919_v31 = vld [vmem:[#allocation2 + $0x40] sm:$0xff] }
 0x20d   : > { %v2684_v23 = vpop.eup %2683  ;;  %2703 = vrcp.f32 %v1558_v30  ;;  %2274 = vmatpush3.bf16.msra.mxu1 %v2630_v53  ;;  %v3633_v7 = vpack.c.bf16 %v3625_v4, %v3622_v0  ;;  %v3678_v30 = vld [vmem:[%s3489_s28 + $0x38] sm:$0xff] }
 0x20e   : > { %v2686_v26 = vpop.eup %2685  ;;  %2705 = vrcp.f32 %v1557_v34  ;;  %2275 = vmatprep.subr.bf16.mxu1 %v2631_v54  ;;  %v3712_v53 = vld [vmem:[%s3489_s28 + $0x58] sm:$0xff] }
 0x20f   : > { %1004 = vperm.xlu1 %2578, %v2672_v16   ;;  %1246 = vmatpush1.bf16.msra.mxu0 %v2602_v12  ;;  %v2688_v29 = vpop.eup %2687  ;;  %v915_v12 = vld [vmem:[#allocation2 + $0x20] sm:$0xff]  ;;  %v3641_v16 = vld [vmem:[%s3489_s28 + $0x10] sm:$0xff] }
 0x210   : > { %1247 = vmatprep.subr.bf16.mxu0 %v2603_v14  ;;  %999 = vperm.xlu0 %2577, %v2674_v8   ;;  %v2690_v33 = vpop.eup %2689  ;;  %v3644_v8 = vld [vmem:[%s3489_s28 + $0x18] sm:$0xff] }
 0x211   : > { %v2692_v36 = vpop.eup %2691 }
 0x212   : > { %v2694_v38 = vpop.eup %2693 }
 0x213   : > { %1582 = vperm.xlu1 %2578, %v2676_v15   ;;  %1248 = vmatpush1.bf16.msra.mxu0 %v2605_v11  ;;  %v2696_v40 = vpop.eup %2695  ;;  %v3652_v15 = vpack.c.bf16 %v3644_v8, %v3641_v16 }
 0x214   : > { %1249 = vmatprep.subr.bf16.mxu0 %v2606_v13  ;;  %1577 = vperm.xlu0 %2577, %v2678_v17   ;;  %v2698_v42 = vpop.eup %2697 }
 0x215   : > { %v2700_v44 = vpop.eup %2699 }
 0x216   : > { %v2702_v46 = vpop.eup %2701 }
 0x217   : > { %1592 = vperm.xlu1 %2578, %v2680_v20   ;;  %1250 = vmatpush1.bf16.msra.mxu0 %v2608_v18  ;;  %v2704_v48 = vpop.eup %2703  ;;  %v918_v18 = vld [vmem:[#allocation2 + $0x38] sm:$0xff]  ;;  %v917_v20 = vld [vmem:[#allocation2 + $0x30] sm:$0xff] }
 0x218   : > { %1251 = vmatprep.subr.bf16.mxu0 %v2609_v19  ;;  %1587 = vperm.xlu0 %2577, %v2682_v21   ;;  %v2706_v49 = vpop.eup %2705 }
 0x21b   : > { %1602 = vperm.xlu1 %2578, %v2684_v23   ;;  %1252 = vmatpush1.bf16.msra.mxu0 %v2611_v22  ;;  %v3658_v22 = vld [vmem:[%s3489_s28 + $0x20] sm:$0xff]  ;;  %v3661_v23 = vld [vmem:[%s3489_s28 + $0x28] sm:$0xff] }
 0x21c   : > { %1253 = vmatprep.subr.bf16.mxu0 %v2612_v25  ;;  %1597 = vperm.xlu0 %2577, %v2686_v26   ;;  %v3669_v26 = vpack.c.bf16 %v3661_v23, %v3658_v22 }
 0x21f   : > { %1612 = vperm.xlu1 %2578, %v2688_v29   ;;  %1254 = vmatpush1.bf16.msra.mxu0 %v2614_v28  ;;  %v920_v28 = vld [vmem:[#allocation2 + $0x48] sm:$0xff] }
 0x220   : > { %1255 = vmatprep.subr.bf16.mxu0 %v2615_v32  ;;  %1607 = vperm.xlu0 %2577, %v2690_v33   ;;  %v3675_v33 = vld [vmem:[%s3489_s28 + $0x30] sm:$0xff] }
 0x221   : > { %v3686_v34 = vpack.c.bf16 %v3678_v30, %v3675_v33 }
 0x223   : > { %1622 = vperm.xlu1 %2578, %v2692_v36   ;;  %1256 = vmatpush1.bf16.msra.mxu0 %v2617_v35 }
 0x224   : > { %1257 = vmatprep.subr.bf16.mxu0 %v2618_v37  ;;  %1617 = vperm.xlu0 %2577, %v2694_v38   ;;  %v922_v38 = vld [vmem:[#allocation2 + $0x58] sm:$0xff] }
 0x227   : > { %1632 = vperm.xlu1 %2578, %v2696_v40   ;;  %1258 = vmatpush1.bf16.msra.mxu0 %v2620_v39  ;;  %v921_v40 = vld [vmem:[#allocation2 + $0x50] sm:$0xff] }
 0x228   : > { %1259 = vmatprep.subr.bf16.mxu0 %v2621_v41  ;;  %1627 = vperm.xlu0 %2577, %v2698_v42   ;;  %v3692_v42 = vld [vmem:[%s3489_s28 + $0x40] sm:$0xff] }
 0x22b   : > { %1642 = vperm.xlu1 %2578, %v2700_v44   ;;  %1260 = vmatpush1.bf16.msra.mxu0 %v2623_v43  ;;  %v3695_v43 = vld [vmem:[%s3489_s28 + $0x48] sm:$0xff] }
 0x22c   : > { %1261 = vmatprep.subr.bf16.mxu0 %v2624_v45  ;;  %1637 = vperm.xlu0 %2577, %v2702_v46   ;;  %v3703_v46 = vpack.c.bf16 %v3695_v43, %v3692_v42 }
 0x22f   : > { %1652 = vperm.xlu1 %2578, %v2704_v48   ;;  %1262 = vmatpush1.bf16.msra.mxu0 %v2626_v47  ;;  %v924_v48 = vld [vmem:[#allocation2 + $0x68] sm:$0xff] }
 0x230   : > { %1647 = vperm.xlu0 %2577, %v2706_v49  }
 0x272   : > { %v940_v55 = vpop.permute.xlu1 %939 }
 0x273   : > { %v930_v57 = vpop.permute.xlu0 %929  ;;  %v3617_v62 = vmul.f32 %v940_v55, %v913_v56  ;;  %v3720_v56 = vpack.c.bf16 %v3712_v53, %v3709_v52 }
 0x274   : > { %v3627_v5 = vmul.f32 %v930_v57, %v911_v59 }
 0x276   : > { %v945_v60 = vpop.permute.xlu1 %944 }
 0x277   : > { %v3619_v63 = vmul.f32 %v945_v60, %v914_v58  ;;  %v935_v2 = vpop.permute.xlu0 %934  ;;  %v926_v58 = vld [vmem:[#allocation2 + $0x78] sm:$0xff]  ;;  %v925_v60 = vld [vmem:[#allocation2 + $0x70] sm:$0xff] }
 0x278   : > { %v3629_v6 = vmul.f32 %v935_v2, %v912_v61  ;;  %v3726_v2 = vld [vmem:[%s3489_s28 + $0x60] sm:$0xff] }
 0x279   : > { %v1032_v9 = vpack.c.bf16 %v3619_v63, %v3617_v62 }
 0x27a   : > { %v1031_v3 = vpack.c.bf16 %v3629_v6, %v3627_v5  ;;  %v955_v1 = vpop.permute.xlu1 %954 }
 0x27b   : > { %v950_v14 = vpop.permute.xlu0 %949  ;;  %v3646_v11 = vmul.f32 %v955_v1, %v916_v10 }
 0x27c   : > { %1263 = vmatprep.mubr.bf16.mxu0 %v1031_v3  ;;  %v3648_v13 = vmul.f32 %v950_v14, %v915_v12  ;;  %v3729_v3 = vld [vmem:[%s3489_s28 + $0x68] sm:$0xff]  ;;  %v3743_v14 = vld [vmem:[%s3489_s28 + $0x70] sm:$0xff] }
 0x27d   : > { %1264 = vmatmul.mubr.bf16.vlgmr.msra.gmra.mrb[0].mxu0 %v3633_v7  ;;  %v3737_v1 = vpack.c.bf16 %v3729_v3, %v3726_v2 }
 0x27e   : > { %1273 = vmatprep.mubr.bf16.mxu0 %v1032_v9  ;;  %v1033_v17 = vpack.c.bf16 %v3646_v11, %v3648_v13  ;;  %v965_v19 = vpop.permute.xlu1 %964 }
 0x27f   : > { %v960_v21 = vpop.permute.xlu0 %959  ;;  %v3663_v24 = vmul.f32 %v965_v19, %v918_v18  ;;  %v2632_v19 = vld [vmem:[#allocation12 + $0x10] sm:$0xff]  }
 0x280   : > { %v3665_v25 = vmul.f32 %v960_v21, %v917_v20  ;;  %2276 = vmatpush3.bf16.msra.mxu1 %v2632_v19  ;;  %v2633_v20 = vld [vmem:[#allocation12 + $0x58] sm:$0xff]  }
 0x281   : > { %v2634_v21 = vld [vmem:[#allocation12 + $0x18] sm:$0xff]   ;;  %2277 = vmatprep.subr.bf16.mxu1 %v2633_v20 }
 0x282   : > { %v1034_v27 = vpack.c.bf16 %v3663_v24, %v3665_v25  ;;  %v975_v29 = vpop.permute.xlu1 %974 }
 0x283   : > { %v970_v32 = vpop.permute.xlu0 %969  ;;  %v3680_v35 = vmul.f32 %v975_v29, %v920_v28  ;;  %v2636_v28 = vld [vmem:[#allocation12 + $0x20] sm:$0xff]   ;;  %v2637_v29 = vld [vmem:[#allocation12 + $0x68] sm:$0xff]  }
 0x284   : > { %v3682_v36 = vmul.f32 %v970_v32, %v919_v31  ;;  %2278 = vmatpush3.bf16.msra.mxu1 %v2634_v21  ;;  %v2638_v31 = vld [vmem:[#allocation12 + $0x28] sm:$0xff]   ;;  %v2639_v32 = vld [vmem:[#allocation12 + $0x70] sm:$0xff]  }
 0x285   : > { %1274 = vmatmul.mubr.bf16.gmra.mrb[4].mxu0 %v3652_v15 }
 0x286   : > { %1283 = vmatprep.mubr.bf16.mxu0 %v1033_v17  ;;  %v1035_v37 = vpack.c.bf16 %v3680_v35, %v3682_v36  ;;  %v985_v39 = vpop.permute.xlu1 %984  ;;  %v3746_v17 = vld [vmem:[%s3489_s28 + $0x78] sm:$0xff] }
 0x287   : > { %v980_v41 = vpop.permute.xlu0 %979  ;;  %v3697_v44 = vmul.f32 %v985_v39, %v922_v38  ;;  %v3750_v18 = vpack.c.bf16 %v3746_v17, %v3743_v14  ;;  %v2641_v38 = vld [vmem:[#allocation12 + $0x78] sm:$0xff]  }
 0x288   : > { %v3699_v45 = vmul.f32 %v980_v41, %v921_v40  ;;  %v2642_v39 = vld [vmem:[#allocation12 + $0x38] sm:$0xff]  }
 0x28a   : > { %v1036_v47 = vpack.c.bf16 %v3697_v44, %v3699_v45  ;;  %v995_v49 = vpop.permute.xlu1 %994 }
 0x28b   : > { %v990_v51 = vpop.permute.xlu0 %989  ;;  %v3714_v54 = vmul.f32 %v995_v49, %v924_v48  ;;  %v3756_v48 = vld [vmem:[%s4077_s30] ss:$0 sm:$0xff] }
 0x28c   : > { %v3716_v55 = vmul.f32 %v990_v51, %v923_v50 }
 0x28d   : > { %1284 = vmatmul.mubr.bf16.gmra.mrb[8].mxu0 %v3669_v26 }
 0x28e   : > { %1293 = vmatprep.mubr.bf16.mxu0 %v1034_v27  ;;  %v1037_v57 = vpack.c.bf16 %v3714_v54, %v3716_v55  ;;  %v1005_v59 = vpop.permute.xlu1 %1004  ;;  %v2635_v27 = vld [vmem:[#allocation12 + $0x60] sm:$0xff]  }
 0x28f   : > { %v1000_v61 = vpop.permute.xlu0 %999  ;;  %v3731_v9 = vmul.f32 %v1005_v59, %v926_v58  ;;  %2279 = vmatprep.subr.bf16.mxu1 %v2635_v27 }
 0x290   : > { %v3733_v10 = vmul.f32 %v1000_v61, %v925_v60  ;;  %2280 = vmatpush3.bf16.msra.mxu1 %v2636_v28 }
 0x291   : > { %2281 = vmatprep.subr.bf16.mxu1 %v2637_v29 }
 0x292   : > { %v1038_v12 = vpack.c.bf16 %v3731_v9, %v3733_v10 }
 0x294   : > { %2282 = vmatpush3.bf16.msra.mxu1 %v2638_v31 }
 0x295   : > { %1294 = vmatmul.mubr.bf16.gmra.mrb[12].mxu0 %v3686_v34  ;;  %2283 = vmatprep.subr.bf16.mxu1 %v2639_v32 }
 0x296   : > { %1303 = vmatprep.mubr.bf16.mxu0 %v1035_v37  ;;  %v2640_v37 = vld [vmem:[#allocation12 + $0x30] sm:$0xff]  }
 0x298   : > { %2284 = vmatpush3.bf16.msra.mxu1 %v2640_v37 }
 0x299   : > { %2285 = vmatprep.subr.bf16.mxu1 %v2641_v38 }
 0x29c   : > { %2286 = vmatpush3.bf16.msra.mxu1 %v2642_v39 }
 0x29d   : > { %1304 = vmatmul.mubr.bf16.gmra.mrb[16].mxu0 %v3703_v46 }
 0x29e   : > { %1313 = vmatprep.mubr.bf16.mxu0 %v1036_v47 }
 0x2a5   : > { %1314 = vmatmul.mubr.bf16.gmra.mrb[20].mxu0 %v3720_v56 }
 0x2a6   : > { %1323 = vmatprep.mubr.bf16.mxu0 %v1037_v57 }
 0x2ad   : > { %1324 = vmatmul.mubr.bf16.gmra.mrb[24].mxu0 %v3737_v1 }
 0x2ae   : > { %1333 = vmatprep.mubr.bf16.mxu0 %v1038_v12 }
 0x2b5   : > { %1334 = vmatmul.mubr.bf16.gmra.mrb[28].mxu0 %v3750_v18 }
 0x350   : > { %v1265_v40 = vpop.f32.mrb[0].mxu0 }
 0x351   : > { %vm1344_vm2 = vcmp.gt.f32.partialorder %v1265_v40, 0.0  ;;  %v1360_v41 = vmul.f32 0.2, %v1265_v40  ;;  %v1267_v47 = vpop.f32.mrb[1].mxu0 }
 0x352   : > { %v1269_v49 = vpop.f32.mrb[2].mxu0  ;;  %v1424_v51 = vmul.f32 0.2, %v1267_v47  ;;  %vm1408_vm4 = vcmp.gt.f32.partialorder %v1267_v47, 0.0 }
 0x353   : > { %v1376_v50 = vsel %vm1344_vm2, %v1265_v40, %v1360_v41  ;;  %vm1345_vm3 = vcmp.gt.f32.partialorder %v1269_v49, 0.0  ;;  %v1361_v57 = vmul.f32 0.2, %v1269_v49  ;;  %v1271_v58 = vpop.f32.mrb[3].mxu0 }
 0x354   : > { %v1392_v59 = vadd.f32 1.0, %v1376_v50  ;;  %v1425_v61 = vmul.f32 0.2, %v1271_v58  ;;  %vm1409_vm5 = vcmp.gt.f32.partialorder %v1271_v58, 0.0  ;;  %v1440_v20 = vsel %vm1408_vm4, %v1267_v47, %v1424_v51 }
 0x355   : > { %v1377_v60 = vsel %vm1345_vm3, %v1269_v49, %v1361_v57 }
 0x356   : > { %v1463_v12 = vmul.f32 %v3756_v48, %v1392_v59  ;;  %v1393_v19 = vadd.f32 1.0, %v1377_v60  ;;  %v1441_v29 = vsel %vm1409_vm5, %v1271_v58, %v1425_v61  ;;  %v1578_v60 = vpop.permute.xlu0 %1577 }
 0x358   : > { %v1479_v21 = vadd.f32 %v1463_v12, %v1440_v20  ;;  %v1464_v27 = vmul.f32 %v3756_v48, %v1393_v19  ;;  %v1275_v28 = vpop.f32.mrb[4].mxu0  ;;  %v1583_v19 = vpop.permute.xlu1 %1582 }
 0x359   : > { %vm1346_vm6 = vcmp.gt.f32.partialorder %v1275_v28, 0.0  ;;  %v1362_v31 = vmul.f32 0.2, %v1275_v28  ;;  %v1277_v32 = vpop.f32.mrb[5].mxu0 }
 0x35a   : > { %v1495_v37 = vadd.f32 %v1479_v21, %v3622_v0  ;;  %v1480_v38 = vadd.f32 %v1464_v27, %v1441_v29  ;;  %v1279_v39 = vpop.f32.mrb[6].mxu0  ;;  %v1426_v41 = vmul.f32 0.2, %v1277_v32  ;;  %vm1410_vm8 = vcmp.gt.f32.partialorder %v1277_v32, 0.0 }
 0x35b   : > { %v1378_v40 = vsel %vm1346_vm6, %v1275_v28, %v1362_v31  ;;  %vm1347_vm7 = vcmp.gt.f32.partialorder %v1279_v39, 0.0  ;;  %v1363_v49 = vmul.f32 0.2, %v1279_v39  ;;  %v1281_v50 = vpop.f32.mrb[7].mxu0 }
 0x35c   : > { %v1496_v47 = vadd.f32 %v1480_v38, %v3625_v4  ;;  %v1394_v51 = vadd.f32 1.0, %v1378_v40  ;;  %v1427_v58 = vmul.f32 0.2, %v1281_v50  ;;  %v1511_v59 = vsub.f32 %v1495_v37, %v3627_v5 }
 0x35d   : > { %v1379_v57 = vsel %vm1347_vm7, %v1279_v39, %v1363_v49  ;;  %vm1411_vm9 = vcmp.gt.f32.partialorder %v1281_v50, 0.0  ;;  %v1442_v20 = vsel %vm1410_vm8, %v1277_v32, %v1426_v41 }
 0x35e   : > { %v1465_v0 = vmul.f32 %v3756_v48, %v1394_v51  ;;  %v1395_v61 = vadd.f32 1.0, %v1379_v57  ;;  %v1512_v12 = vsub.f32 %v1496_v47, %v3629_v6  ;;  %1527 = vst [vmem:[%s3501_s19] sm:$0xff] %v1511_v59  ;;  %v1655_v21 = vmul.f32 %v1578_v60, %v1511_v59 }
 0x35f   : > { %v1443_v31 = vsel %vm1411_vm9, %v1281_v50, %v1427_v58 }
 0x360   : > { %v1481_v27 = vadd.f32 %v1465_v0, %v1442_v20  ;;  %v1466_v4 = vmul.f32 %v3756_v48, %v1395_v61  ;;  %v1285_v28 = vpop.f32.mrb[8].mxu0  ;;  %1528 = vst [vmem:[%s3501_s19 + $0x8] sm:$0xff] %v1512_v12  ;;  %v1656_v29 = vmul.f32 %v1583_v19, %v1512_v12  ;;  %v1671_v32 = vadd.f32 %v1655_v21, %v3627_v5 }
 0x361   : > { %vm1348_vm10 = vcmp.gt.f32.partialorder %v1285_v28, 0.0  ;;  %v1364_v37 = vmul.f32 0.2, %v1285_v28  ;;  %v1287_v38 = vpop.f32.mrb[9].mxu0 }
 0x362   : > { %v1497_v39 = vadd.f32 %v1481_v27, %v3641_v16  ;;  %v1482_v40 = vadd.f32 %v1466_v4, %v1443_v31  ;;  %v1428_v49 = vmul.f32 0.2, %v1287_v38  ;;  %v1289_v51 = vpop.f32.mrb[10].mxu0  ;;  %v1672_v59 = vadd.f32 %v1656_v29, %v3629_v6  ;;  %v1588_v16 = vpop.permute.xlu0 %1587 }
 0x363   : > { %v1380_v41 = vsel %vm1348_vm10, %v1285_v28, %v1364_v37  ;;  %vm1349_vm11 = vcmp.gt.f32.partialorder %v1289_v51, 0.0  ;;  %v1365_v47 = vmul.f32 0.2, %v1289_v51  ;;  %v1291_v57 = vpop.f32.mrb[11].mxu0  ;;  %vm1412_vm12 = vcmp.gt.f32.partialorder %v1287_v38, 0.0  ;;  %v1593_v6 = vpop.permute.xlu1 %1592 }
 0x364   : > { %v1513_v60 = vsub.f32 %v1497_v39, %v3617_v62  ;;  %v1498_v50 = vadd.f32 %v1482_v40, %v3644_v8  ;;  %v1396_v58 = vadd.f32 1.0, %v1380_v41  ;;  %vm1413_vm13 = vcmp.gt.f32.partialorder %v1291_v57, 0.0 }
 0x365   : > { %v1381_v0 = vsel %vm1349_vm11, %v1289_v51, %v1365_v47  ;;  %v1429_v61 = vmul.f32 0.2, %v1291_v57  ;;  %v1687_v12 = vpack.c.bf16 %v1672_v59, %v1671_v32  ;;  %v1444_v27 = vsel %vm1412_vm12, %v1287_v38, %v1428_v49 }
 0x366   : > { %1529 = vst [vmem:[%s3501_s19 + $0x10] sm:$0xff] %v1513_v60  ;;  %v1514_v5 = vsub.f32 %v1498_v50, %v3619_v63  ;;  %v1467_v19 = vmul.f32 %v3756_v48, %v1396_v58  ;;  %v1397_v20 = vadd.f32 1.0, %v1381_v0  ;;  %v1657_v21 = vmul.f32 %v1588_v16, %v1513_v60 }
 0x367   : > { %1855 = vmatprep.mubr.bf16.mxu1 %v1687_v12  ;;  %v1445_v31 = vsel %vm1413_vm13, %v1291_v57, %v1429_v61 }
 0x368   : > { %1530 = vst [vmem:[%s3501_s19 + $0x18] sm:$0xff] %v1514_v5  ;;  %v1483_v8 = vadd.f32 %v1467_v19, %v1444_v27  ;;  %v1468_v4 = vmul.f32 %v3756_v48, %v1397_v20  ;;  %1856 = vmatmul.mubr.bf16.vlgmr.msra.gmra.mrb[0].mxu1 %v3633_v7  ;;  %v1295_v28 = vpop.f32.mrb[12].mxu0  ;;  %v1658_v29 = vmul.f32 %v1593_v6, %v1514_v5 }
 0x369   : > { %vm1350_vm14 = vcmp.gt.f32.partialorder %v1295_v28, 0.0  ;;  %v1366_v37 = vmul.f32 0.2, %v1295_v28  ;;  %v1297_v39 = vpop.f32.mrb[13].mxu0  ;;  %v1673_v38 = vadd.f32 %v1657_v21, %v3617_v62 }
 0x36a   : > { %v1499_v40 = vadd.f32 %v1483_v8, %v3658_v22  ;;  %v1484_v51 = vadd.f32 %v1468_v4, %v1445_v31  ;;  %v1430_v32 = vmul.f32 0.2, %v1297_v39  ;;  %v1299_v41 = vpop.f32.mrb[14].mxu0  ;;  %v1674_v7 = vadd.f32 %v1658_v29, %v3619_v63  ;;  %v1598_v22 = vpop.permute.xlu0 %1597 }
 0x36b   : > { %v1382_v49 = vsel %vm1350_vm14, %v1295_v28, %v1366_v37  ;;  %vm1351_vm15 = vcmp.gt.f32.partialorder %v1299_v41, 0.0  ;;  %v1367_v47 = vmul.f32 0.2, %v1299_v41  ;;  %v1301_v59 = vpop.f32.mrb[15].mxu0  ;;  %vm1414_vm0 = vcmp.gt.f32.partialorder %v1297_v39, 0.0  ;;  %v1603_v63 = vpop.permute.xlu1 %1602 }
 0x36c   : > { %v1515_v60 = vsub.f32 %v1499_v40, %v3648_v13  ;;  %v1500_v57 = vadd.f32 %v1484_v51, %v3661_v23  ;;  %v1398_v50 = vadd.f32 1.0, %v1382_v49  ;;  %vm1415_vm1 = vcmp.gt.f32.partialorder %v1301_v59, 0.0 }
 0x36d   : > { %v1383_v58 = vsel %vm1351_vm15, %v1299_v41, %v1367_v47  ;;  %v1431_v16 = vmul.f32 0.2, %v1301_v59  ;;  %v1688_v0 = vpack.c.bf16 %v1674_v7, %v1673_v38  ;;  %v1446_v19 = vsel %vm1414_vm0, %v1297_v39, %v1430_v32 }
 0x36e   : > { %1531 = vst [vmem:[%s3501_s19 + $0x20] sm:$0xff] %v1515_v60  ;;  %v1516_v62 = vsub.f32 %v1500_v57, %v3646_v11  ;;  %v1469_v61 = vmul.f32 %v3756_v48, %v1398_v50  ;;  %v1399_v12 = vadd.f32 1.0, %v1383_v58  ;;  %v1659_v5 = vmul.f32 %v1598_v22, %v1515_v60 }
 0x36f   : > { %1863 = vmatprep.mubr.bf16.mxu1 %v1688_v0  ;;  %v1447_v27 = vsel %vm1415_vm1, %v1301_v59, %v1431_v16 }
 0x370   : > { %1532 = vst [vmem:[%s3501_s19 + $0x28] sm:$0xff] %v1516_v62  ;;  %v1485_v23 = vadd.f32 %v1469_v61, %v1446_v19  ;;  %v1470_v20 = vmul.f32 %v3756_v48, %v1399_v12  ;;  %1864 = vmatmul.mubr.bf16.gmra.mrb[4].mxu1 %v3652_v15  ;;  %v1305_v21 = vpop.f32.mrb[16].mxu0  ;;  %v1660_v6 = vmul.f32 %v1603_v63, %v1516_v62 }
 0x371   : > { %vm1352_vm2 = vcmp.gt.f32.partialorder %v1305_v21, 0.0  ;;  %v1368_v8 = vmul.f32 0.2, %v1305_v21  ;;  %v1307_v4 = vpop.f32.mrb[17].mxu0  ;;  %v1675_v39 = vadd.f32 %v1659_v5, %v3648_v13 }
 0x372   : > { %v1501_v28 = vadd.f32 %v1485_v23, %v3675_v33  ;;  %v1486_v29 = vadd.f32 %v1470_v20, %v1447_v27  ;;  %v1432_v31 = vmul.f32 0.2, %v1307_v4  ;;  %v1309_v37 = vpop.f32.mrb[18].mxu0  ;;  %v1676_v15 = vadd.f32 %v1660_v6, %v3646_v11  ;;  %v1608_v33 = vpop.permute.xlu0 %1607 }
 0x373   : > { %v1384_v40 = vsel %vm1352_vm2, %v1305_v21, %v1368_v8  ;;  %vm1353_vm3 = vcmp.gt.f32.partialorder %v1309_v37, 0.0  ;;  %v1369_v51 = vmul.f32 0.2, %v1309_v37  ;;  %v1311_v32 = vpop.f32.mrb[19].mxu0  ;;  %vm1416_vm4 = vcmp.gt.f32.partialorder %v1307_v4, 0.0  ;;  %v1613_v11 = vpop.permute.xlu1 %1612 }
 0x374   : > { %v1517_v41 = vsub.f32 %v1501_v28, %v3665_v25  ;;  %v1502_v38 = vadd.f32 %v1486_v29, %v3678_v30  ;;  %v1400_v49 = vadd.f32 1.0, %v1384_v40  ;;  %vm1417_vm5 = vcmp.gt.f32.partialorder %v1311_v32, 0.0 }
 0x375   : > { %v1385_v47 = vsel %vm1353_vm3, %v1309_v37, %v1369_v51  ;;  %v1433_v59 = vmul.f32 0.2, %v1311_v32  ;;  %v1689_v7 = vpack.c.bf16 %v1676_v15, %v1675_v39  ;;  %v1448_v22 = vsel %vm1416_vm4, %v1307_v4, %v1432_v31 }
 0x376   : > { %1533 = vst [vmem:[%s3501_s19 + $0x30] sm:$0xff] %v1517_v41  ;;  %v1518_v13 = vsub.f32 %v1502_v38, %v3663_v24  ;;  %v1471_v60 = vmul.f32 %v3756_v48, %v1400_v49  ;;  %v1401_v57 = vadd.f32 1.0, %v1385_v47  ;;  %v1661_v50 = vmul.f32 %v1608_v33, %v1517_v41 }
 0x377   : > { %1871 = vmatprep.mubr.bf16.mxu1 %v1689_v7  ;;  %v1449_v62 = vsel %vm1417_vm5, %v1311_v32, %v1433_v59 }
 0x378   : > { %1534 = vst [vmem:[%s3501_s19 + $0x38] sm:$0xff] %v1518_v13  ;;  %v1487_v30 = vadd.f32 %v1471_v60, %v1448_v22  ;;  %v1472_v58 = vmul.f32 %v3756_v48, %v1401_v57  ;;  %1872 = vmatmul.mubr.bf16.gmra.mrb[8].mxu1 %v3669_v26  ;;  %v1315_v16 = vpop.f32.mrb[20].mxu0  ;;  %v1662_v0 = vmul.f32 %v1613_v11, %v1518_v13 }
 0x379   : > { %vm1354_vm6 = vcmp.gt.f32.partialorder %v1315_v16, 0.0  ;;  %v1370_v61 = vmul.f32 0.2, %v1315_v16  ;;  %v1317_v12 = vpop.f32.mrb[21].mxu0  ;;  %v1677_v20 = vadd.f32 %v1661_v50, %v3665_v25 }
 0x37a   : > { %v1503_v5 = vadd.f32 %v1487_v30, %v3692_v42  ;;  %v1488_v63 = vadd.f32 %v1472_v58, %v1449_v62  ;;  %v1434_v19 = vmul.f32 0.2, %v1317_v12  ;;  %v1319_v23 = vpop.f32.mrb[22].mxu0  ;;  %v1678_v26 = vadd.f32 %v1662_v0, %v3663_v24  ;;  %v1618_v42 = vpop.permute.xlu0 %1617 }
 0x37b   : > { %v1386_v21 = vsel %vm1354_vm6, %v1315_v16, %v1370_v61  ;;  %vm1355_vm7 = vcmp.gt.f32.partialorder %v1319_v23, 0.0  ;;  %v1371_v6 = vmul.f32 0.2, %v1319_v23  ;;  %v1321_v27 = vpop.f32.mrb[23].mxu0  ;;  %vm1418_vm8 = vcmp.gt.f32.partialorder %v1317_v12, 0.0  ;;  %v1623_v24 = vpop.permute.xlu1 %1622 }
 0x37c   : > { %v1519_v8 = vsub.f32 %v1503_v5, %v3682_v36  ;;  %v1504_v4 = vadd.f32 %v1488_v63, %v3695_v43  ;;  %v1402_v28 = vadd.f32 1.0, %v1386_v21  ;;  %vm1419_vm9 = vcmp.gt.f32.partialorder %v1321_v27, 0.0 }
 0x37d   : > { %v1387_v29 = vsel %vm1355_vm7, %v1319_v23, %v1371_v6  ;;  %v1435_v31 = vmul.f32 0.2, %v1321_v27  ;;  %v1690_v37 = vpack.c.bf16 %v1678_v26, %v1677_v20  ;;  %v1450_v32 = vsel %vm1418_vm8, %v1317_v12, %v1434_v19 }
 0x37e   : > { %1535 = vst [vmem:[%s3501_s19 + $0x40] sm:$0xff] %v1519_v8  ;;  %v1520_v25 = vsub.f32 %v1504_v4, %v3680_v35  ;;  %v1473_v39 = vmul.f32 %v3756_v48, %v1402_v28  ;;  %v1403_v40 = vadd.f32 1.0, %v1387_v29  ;;  %v1663_v51 = vmul.f32 %v1618_v42, %v1519_v8 }
 0x37f   : > { %1879 = vmatprep.mubr.bf16.mxu1 %v1690_v37  ;;  %v1451_v49 = vsel %vm1419_vm9, %v1321_v27, %v1435_v31 }
 0x380   : > { %1536 = vst [vmem:[%s3501_s19 + $0x48] sm:$0xff] %v1520_v25  ;;  %v1489_v43 = vadd.f32 %v1473_v39, %v1450_v32  ;;  %v1474_v15 = vmul.f32 %v3756_v48, %v1403_v40  ;;  %1880 = vmatmul.mubr.bf16.gmra.mrb[12].mxu1 %v3686_v34  ;;  %v1325_v41 = vpop.f32.mrb[24].mxu0  ;;  %v1664_v38 = vmul.f32 %v1623_v24, %v1520_v25 }
 0x381   : > { %vm1356_vm10 = vcmp.gt.f32.partialorder %v1325_v41, 0.0  ;;  %v1372_v33 = vmul.f32 0.2, %v1325_v41  ;;  %v1327_v47 = vpop.f32.mrb[25].mxu0  ;;  %v1679_v57 = vadd.f32 %v1663_v51, %v3682_v36 }
 0x382   : > { %v1505_v59 = vadd.f32 %v1489_v43, %v3709_v52  ;;  %v1490_v7 = vadd.f32 %v1474_v15, %v1451_v49  ;;  %v1436_v13 = vmul.f32 0.2, %v1327_v47  ;;  %v1329_v60 = vpop.f32.mrb[26].mxu0  ;;  %v1680_v34 = vadd.f32 %v1664_v38, %v3680_v35  ;;  %v1628_v52 = vpop.permute.xlu0 %1627 }
 0x383   : > { %v1388_v50 = vsel %vm1356_vm10, %v1325_v41, %v1372_v33  ;;  %vm1357_vm11 = vcmp.gt.f32.partialorder %v1329_v60, 0.0  ;;  %v1373_v11 = vmul.f32 0.2, %v1329_v60  ;;  %v1331_v22 = vpop.f32.mrb[27].mxu0  ;;  %vm1420_vm12 = vcmp.gt.f32.partialorder %v1327_v47, 0.0  ;;  %v1633_v35 = vpop.permute.xlu1 %1632 }
 0x384   : > { %v1521_v30 = vsub.f32 %v1505_v59, %v3699_v45  ;;  %v1506_v58 = vadd.f32 %v1490_v7, %v3712_v53  ;;  %v1404_v16 = vadd.f32 1.0, %v1388_v50  ;;  %vm1421_vm13 = vcmp.gt.f32.partialorder %v1331_v22, 0.0 }
 0x385   : > { %v1389_v0 = vsel %vm1357_vm11, %v1329_v60, %v1373_v11  ;;  %v1437_v62 = vmul.f32 0.2, %v1331_v22  ;;  %v1691_v61 = vpack.c.bf16 %v1680_v34, %v1679_v57  ;;  %v1452_v19 = vsel %vm1420_vm12, %v1327_v47, %v1436_v13 }
 0x386   : > { %1537 = vst [vmem:[%s3501_s19 + $0x50] sm:$0xff] %v1521_v30  ;;  %v1522_v36 = vsub.f32 %v1506_v58, %v3697_v44  ;;  %v1475_v12 = vmul.f32 %v3756_v48, %v1404_v16  ;;  %v1405_v5 = vadd.f32 1.0, %v1389_v0  ;;  %v1665_v63 = vmul.f32 %v1628_v52, %v1521_v30 }
 0x387   : > { %1887 = vmatprep.mubr.bf16.mxu1 %v1691_v61  ;;  %v1453_v6 = vsel %vm1421_vm13, %v1331_v22, %v1437_v62 }
 0x388   : > { %1538 = vst [vmem:[%s3501_s19 + $0x58] sm:$0xff] %v1522_v36  ;;  %v1491_v53 = vadd.f32 %v1475_v12, %v1452_v19  ;;  %v1476_v23 = vmul.f32 %v3756_v48, %v1405_v5  ;;  %1888 = vmatmul.mubr.bf16.gmra.mrb[16].mxu1 %v3703_v46  ;;  %v1335_v20 = vpop.f32.mrb[28].mxu0  ;;  %v1666_v21 = vmul.f32 %v1633_v35, %v1522_v36 }
 0x389   : > { %vm1358_vm14 = vcmp.gt.f32.partialorder %v1335_v20, 0.0  ;;  %v1374_v27 = vmul.f32 0.2, %v1335_v20  ;;  %v1337_v26 = vpop.f32.mrb[29].mxu0  ;;  %v1681_v29 = vadd.f32 %v1665_v63, %v3699_v45 }
 0x38a   : > { %v1507_v8 = vadd.f32 %v1491_v53, %v3726_v2  ;;  %v1492_v4 = vadd.f32 %v1476_v23, %v1453_v6  ;;  %v1438_v28 = vmul.f32 0.2, %v1337_v26  ;;  %v1339_v42 = vpop.f32.mrb[30].mxu0  ;;  %v1682_v46 = vadd.f32 %v1666_v21, %v3697_v44  ;;  %v1638_v2 = vpop.permute.xlu0 %1637 }
 0x38b   : > { %v1390_v31 = vsel %vm1358_vm14, %v1335_v20, %v1374_v27  ;;  %vm1359_vm15 = vcmp.gt.f32.partialorder %v1339_v42, 0.0  ;;  %v1375_v37 = vmul.f32 0.2, %v1339_v42  ;;  %v1341_v25 = vpop.f32.mrb[31].mxu0  ;;  %vm1422_vm0 = vcmp.gt.f32.partialorder %v1337_v26, 0.0  ;;  %v1643_v44 = vpop.permute.xlu1 %1642 }
 0x38c   : > { %v1523_v39 = vsub.f32 %v1507_v8, %v3716_v55  ;;  %v1508_v40 = vadd.f32 %v1492_v4, %v3729_v3  ;;  %v1406_v51 = vadd.f32 1.0, %v1390_v31  ;;  %vm1423_vm1 = vcmp.gt.f32.partialorder %v1341_v25, 0.0 }
 0x38d   : > { %v1391_v24 = vsel %vm1359_vm15, %v1339_v42, %v1375_v37  ;;  %v1439_v32 = vmul.f32 0.2, %v1341_v25  ;;  %v1692_v43 = vpack.c.bf16 %v1682_v46, %v1681_v29  ;;  %v1454_v49 = vsel %vm1422_vm0, %v1337_v26, %v1438_v28 }
 0x38e   : > { %1539 = vst [vmem:[%s3501_s19 + $0x60] sm:$0xff] %v1523_v39  ;;  %v1524_v45 = vsub.f32 %v1508_v40, %v3714_v54  ;;  %v1477_v15 = vmul.f32 %v3756_v48, %v1406_v51  ;;  %v1407_v41 = vadd.f32 1.0, %v1391_v24  ;;  %v1667_v38 = vmul.f32 %v1638_v2, %v1523_v39  ;;  %v1648_v34 = vpop.permute.xlu0 %1647 }
 0x38f   : > { %1895 = vmatprep.mubr.bf16.mxu1 %v1692_v43  ;;  %v1455_v59 = vsel %vm1423_vm1, %v1341_v25, %v1439_v32  ;;  %v1653_v30 = vpop.permute.xlu1 %1652 }
 0x390   : > { %1540 = vst [vmem:[%s3501_s19 + $0x68] sm:$0xff] %v1524_v45  ;;  %v1493_v3 = vadd.f32 %v1477_v15, %v1454_v49  ;;  %v1478_v33 = vmul.f32 %v3756_v48, %v1407_v41  ;;  %1896 = vmatmul.mubr.bf16.gmra.mrb[20].mxu1 %v3720_v56  ;;  %v1668_v47 = vmul.f32 %v1643_v44, %v1524_v45 }
 0x391   : > { %v1683_v60 = vadd.f32 %v1667_v38, %v3716_v55 }
 0x392   : > { %v1509_v7 = vadd.f32 %v1493_v3, %v3743_v14  ;;  %v1494_v13 = vadd.f32 %v1478_v33, %v1455_v59  ;;  %v1684_v57 = vadd.f32 %v1668_v47, %v3714_v54 }
 0x394   : > { %v1525_v50 = vsub.f32 %v1509_v7, %v3733_v10  ;;  %v1510_v11 = vadd.f32 %v1494_v13, %v3746_v17  ;;  %v1693_v22 = vpack.c.bf16 %v1684_v57, %v1683_v60 }
 0x396   : > { %1541 = vst [vmem:[%s3501_s19 + $0x70] sm:$0xff] %v1525_v50  ;;  %v1526_v56 = vsub.f32 %v1510_v11, %v3731_v9  ;;  %1903 = vmatprep.mubr.bf16.mxu1 %v1693_v22  ;;  %v1669_v48 = vmul.f32 %v1648_v34, %v1525_v50 }
 0x398   : > { %1542 = vst [vmem:[%s3501_s19 + $0x78] sm:$0xff] %v1526_v56  ;;  %1904 = vmatmul.mubr.bf16.gmra.mrb[24].mxu1 %v3737_v1  ;;  %v1670_v55 = vmul.f32 %v1653_v30, %v1526_v56  ;;  %v1685_v54 = vadd.f32 %v1669_v48, %v3733_v10 }
 0x39a   : > { %v1686_v14 = vadd.f32 %v1670_v55, %v3731_v9 }
 0x39c   : > { %v1694_v58 = vpack.c.bf16 %v1686_v14, %v1685_v54 }
 0x39e   : > { %1911 = vmatprep.mubr.bf16.mxu1 %v1694_v58 }
 0x3a0   : > { %1912 = vmatmul.mubr.bf16.gmra.mrb[28].mxu1 %v3750_v18 }
 0x43b   : > { %v2287_v17 = vpop.f32.mrb[0].mxu1 }
 0x43c   : > { %v2288_v16 = vpop.f32.mrb[1].mxu1 }
 0x43d   : > { %v2289_v52 = vadd.f32 %v2288_v16, %v2287_v17  ;;  %v2290_v0 = vpop.f32.mrb[2].mxu1 }
 0x43e   : > { %v2291_v62 = vpop.f32.mrb[3].mxu1 }
 0x43f   : > { %1920 = vst [vmem:[%s3499_s10] sm:$0xff] %v2289_v52  ;;  %v2292_v61 = vadd.f32 %v2291_v62, %v2290_v0 }
 0x441   : > { %1921 = vst [vmem:[%s3499_s10 + $0x8] sm:$0xff] %v2292_v61 }
 0x443   : > { %v2293_v1 = vpop.f32.mrb[4].mxu1 }
 0x444   : > { %v2294_v10 = vpop.f32.mrb[5].mxu1 }
 0x445   : > { %v2295_v36 = vadd.f32 %v2294_v10, %v2293_v1  ;;  %v2296_v9 = vpop.f32.mrb[6].mxu1 }
 0x446   : > { %v2297_v12 = vpop.f32.mrb[7].mxu1 }
 0x447   : > { %1922 = vst [vmem:[%s3499_s10 + $0x10] sm:$0xff] %v2295_v36  ;;  %v2298_v5 = vadd.f32 %v2297_v12, %v2296_v9 }
 0x449   : > { %1923 = vst [vmem:[%s3499_s10 + $0x18] sm:$0xff] %v2298_v5 }
 0x44b   : > { %v2299_v18 = vpop.f32.mrb[8].mxu1 }
 0x44c   : > { %v2300_v63 = vpop.f32.mrb[9].mxu1 }
 0x44d   : > { %v2301_v35 = vadd.f32 %v2300_v63, %v2299_v18  ;;  %v2302_v19 = vpop.f32.mrb[10].mxu1 }
 0x44e   : > { %v2303_v53 = vpop.f32.mrb[11].mxu1 }
 0x44f   : > { %1924 = vst [vmem:[%s3499_s10 + $0x20] sm:$0xff] %v2301_v35  ;;  %v2304_v23 = vadd.f32 %v2303_v53, %v2302_v19 }
 0x451   : > { %1925 = vst [vmem:[%s3499_s10 + $0x28] sm:$0xff] %v2304_v23 }
 0x453   : > { %v2305_v20 = vpop.f32.mrb[12].mxu1 }
 0x454   : > { %v2306_v21 = vpop.f32.mrb[13].mxu1 }
 0x455   : > { %v2307_v6 = vadd.f32 %v2306_v21, %v2305_v20  ;;  %v2308_v27 = vpop.f32.mrb[14].mxu1 }
 0x456   : > { %v2309_v26 = vpop.f32.mrb[15].mxu1 }
 0x457   : > { %1926 = vst [vmem:[%s3499_s10 + $0x30] sm:$0xff] %v2307_v6  ;;  %v2310_v8 = vadd.f32 %v2309_v26, %v2308_v27 }
 0x459   : > { %1927 = vst [vmem:[%s3499_s10 + $0x38] sm:$0xff] %v2310_v8 }
 0x45b   : > { %v2311_v4 = vpop.f32.mrb[16].mxu1 }
 0x45c   : > { %v2312_v28 = vpop.f32.mrb[17].mxu1 }
 0x45d   : > { %v2313_v42 = vadd.f32 %v2312_v28, %v2311_v4  ;;  %v2314_v29 = vpop.f32.mrb[18].mxu1 }
 0x45e   : > { %v2315_v31 = vpop.f32.mrb[19].mxu1 }
 0x45f   : > { %1928 = vst [vmem:[%s3499_s10 + $0x40] sm:$0xff] %v2313_v42  ;;  %v2316_v37 = vadd.f32 %v2315_v31, %v2314_v29 }
 0x461   : > { %1929 = vst [vmem:[%s3499_s10 + $0x48] sm:$0xff] %v2316_v37 }
 0x463   : > { %v2317_v25 = vpop.f32.mrb[20].mxu1 }
 0x464   : > { %v2318_v46 = vpop.f32.mrb[21].mxu1 }
 0x465   : > { %v2319_v39 = vadd.f32 %v2318_v46, %v2317_v25  ;;  %v2320_v40 = vpop.f32.mrb[22].mxu1 }
 0x466   : > { %v2321_v51 = vpop.f32.mrb[23].mxu1 }
 0x467   : > { %1930 = vst [vmem:[%s3499_s10 + $0x50] sm:$0xff] %v2319_v39  ;;  %v2322_v2 = vadd.f32 %v2321_v51, %v2320_v40 }
 0x469   : > { %1931 = vst [vmem:[%s3499_s10 + $0x58] sm:$0xff] %v2322_v2 }
 0x46b   : > { %v2323_v24 = vpop.f32.mrb[24].mxu1 }
 0x46c   : > { %v2324_v32 = vpop.f32.mrb[25].mxu1 }
 0x46d   : > { %v2325_v43 = vadd.f32 %v2324_v32, %v2323_v24  ;;  %v2326_v45 = vpop.f32.mrb[26].mxu1 }
 0x46e   : > { %v2327_v15 = vpop.f32.mrb[27].mxu1 }
 0x46f   : > { %1932 = vst [vmem:[%s3499_s10 + $0x60] sm:$0xff] %v2325_v43  ;;  %v2328_v41 = vadd.f32 %v2327_v15, %v2326_v45 }
 0x471   : > { %1933 = vst [vmem:[%s3499_s10 + $0x68] sm:$0xff] %v2328_v41 }
 0x473   : > { %v2329_v38 = vpop.f32.mrb[28].mxu1 }
 0x474   : > { %v2330_v44 = vpop.f32.mrb[29].mxu1 }
 0x475   : > { %v2331_v49 = vadd.f32 %v2330_v44, %v2329_v38  ;;  %v2332_v3 = vpop.f32.mrb[30].mxu1 }
 0x476   : > { %v2333_v33 = vpop.f32.mrb[31].mxu1 }
 0x477   : > { %1934 = vst [vmem:[%s3499_s10 + $0x70] sm:$0xff] %v2331_v49  ;;  %v2334_v47 = vadd.f32 %v2333_v33, %v2332_v3 }
 0x479   : > { %1935 = vst [vmem:[%s3499_s10 + $0x78] sm:$0xff] %v2334_v47 }
 0x47a PF: > { %s4078_s21 = sld [smem:[#allocation25_spill]]  ;;  %s1955_s3 = sshll.u32 %s3499_s10, 4  ;;  %s3877_s3 = int_to_ptr.vmem [resolvable:$true] %s1955_s3 }
 0x47b   : > { %s4079_s16 = sld [smem:[#allocation35_spill]]  ;;  %s1937_s28 = scalar_lea.sflag [#allocation6], %s3486_s6 }
 0x47c   : > { %s2853_s23 = scalar_lea.vmem %s3877_s3, 2048  ;;  %p4080_p8 = scmp.ne.s32.totalorder %s4062_s29, 0 }
 0x47d   : > { %p2854_p12 = scmp.ne.s32.totalorder %s3877_s3, %s2853_s23  ;;  %s3056_s15 = smov [#allocation13]  }
 0x47e   : > { %s2857_s18 = sshll.u32 %s3056_s15, 4  ;;  %s2858_s18 = int_to_ptr.vmem [resolvable:$false] %s2857_s18 }
 0x47f   : > { %p2855_p11 = pnand %p2854_p12, %p4080_p8  ;;  %s2859_s1 = scalar_lea.vmem %s2858_s18, 4096 }
 0x480   : > { %s2253_s11 = sshll.u32 %s4078_s21, 11  ;;  %p2860_p9 = scmp.lt.s32.totalorder %s3877_s3, %s2858_s18 }
 0x481   : > { %s3874_s27 = scalar_lea.hbm %s4079_s16, %s2253_s11  ;;  %p2856_p3 = pneg %p2855_p11 }
 0x482   : > { %p2861_p1 = scmp.lt.s32.totalorder %s2859_s1, %s2853_s23 }
 0x484   : > { %p2862_p6 = por %p2861_p1, %p2860_p9 }
 0x486   : > { %p2863_p4 = pnand %p2862_p6, %p2856_p3 }
 0x488   : > { %2866 = shalt.err (!%p2863_p4)
}
 0x489   : > { %s2867_s10 = scalar_lea.hbm %s3874_s27, 2048  ;;  %s2871_s20 = scalar_lea.hbm %s4079_s16, 4096 }
 0x48a   : > { %p2868_p10 = scmp.ne.s32.totalorder %s3874_s27, %s2867_s10  ;;  %p2872_p13 = scmp.lt.u32.totalorder %s3874_s27, %s4079_s16 }
 0x48b   : > { %p2873_p0 = scmp.lt.u32.totalorder %s2871_s20, %s2867_s10  ;;  %p2875_p12 = scmp.lt.u32.totalorder %s2867_s10, %s3874_s27 }
 0x48c   : > { %p2869_p7 = pnand %p2868_p10, %p4080_p8 }
 0x48d   : > { %p2874_p5 = por %p2873_p0, %p2872_p13 }
 0x48e   : > { %p2870_p2 = pneg %p2869_p7 }
 0x48f   : > { %p2876_p11 = por %p2875_p12, %p2874_p5 }
 0x491   : > { %p2877_p3 = pnand %p2876_p11, %p2870_p2 }
 0x493   : > { %2880 = shalt.err (!%p2877_p3)
}
 0x494   : > { %s3057_s23 = smov 128   ;;  %s3058_s1 = smov 8  }
 0x495   : > { %2397 = dma.vmem_to_hbm [thread:$0]  (%p4080_p8), %s3877_s3, 2048, %s3874_s27, %s1937_s28, %s3057_s23, %s3057_s23, %s3058_s1  }
 0x496   : > { %s4081_s17 = sld [smem:[#allocation36_spill]]  ;;  %s1971_s15 = sshll.u32 %s3501_s19, 4  ;;  %s3914_s15 = int_to_ptr.vmem [resolvable:$true] %s1971_s15 }
 0x497   : > { %s1942_s18 = scalar_lea.sflag [#allocation15], %s3486_s6  ;;  %s2881_s0 = scalar_lea.vmem %s3914_s15, 2048 }
 0x498   : > { %p2882_p9 = scmp.ne.s32.totalorder %s3914_s15, %s2881_s0  ;;  %s3059_s2 = smov [#allocation14]  }
 0x499   : > { %s2885_s27 = sshll.u32 %s3059_s2, 4  ;;  %s2886_s27 = int_to_ptr.vmem [resolvable:$false] %s2885_s27 }
 0x49a   : > { %p2883_p1 = pnand %p2882_p9, %p4080_p8  ;;  %s2887_s21 = scalar_lea.vmem %s2886_s27, 4096 }
 0x49b   : > { %p2888_p4 = scmp.lt.s32.totalorder %s3914_s15, %s2886_s27  ;;  %p2889_p10 = scmp.lt.s32.totalorder %s2887_s21, %s2881_s0 }
 0x49c   : > { %s3911_s20 = scalar_lea.hbm %s4081_s17, %s2253_s11  ;;  %p2884_p6 = pneg %p2883_p1 }
 0x49d   : > { %p2890_p7 = por %p2889_p10, %p2888_p4 }
 0x49f   : > { %p2891_p2 = pnand %p2890_p7, %p2884_p6 }
 0x4a1   : > { %2894 = shalt.err (!%p2891_p2)
}
 0x4a2   : > { %s2895_s19 = scalar_lea.hbm %s3911_s20, 2048  ;;  %s2899_s2 = scalar_lea.hbm %s4081_s17, 4096 }
 0x4a3   : > { %p2896_p13 = scmp.ne.s32.totalorder %s3911_s20, %s2895_s19  ;;  %p2900_p12 = scmp.lt.u32.totalorder %s3911_s20, %s4081_s17 }
 0x4a4   : > { %p2901_p11 = scmp.lt.u32.totalorder %s2899_s2, %s2895_s19  ;;  %p2903_p9 = scmp.lt.u32.totalorder %s2895_s19, %s3911_s20 }
 0x4a5   : > { %p2897_p0 = pnand %p2896_p13, %p4080_p8 }
 0x4a6   : > { %p2902_p3 = por %p2901_p11, %p2900_p12 }
 0x4a7   : > { %p2898_p5 = pneg %p2897_p0 }
 0x4a8   : > { %p2904_p1 = por %p2903_p9, %p2902_p3 }
 0x4aa   : > { %p2905_p6 = pnand %p2904_p1, %p2898_p5 }
 0x4ac   : > { %2908 = shalt.err (!%p2905_p6)
}
 0x4ad   : > { %2398 = dma.vmem_to_hbm [thread:$0]  (%p4080_p8), %s3914_s15, 2048, %s3911_s20, %s1942_s18, %s3057_s23, %s3057_s23, %s3058_s1  }
 0x4ae PF: > { %p2430_p4 = scmp.ge.s32.totalorder %s3043_s14, 2  ;;  %s1986_s0 = sand.u32 1, %s2991_s24  }
 0x4af   : > { %p4082_p10 = scmp.ne.s32.totalorder %s4063_s22, 0  ;;  %s1987_s30 = scalar_lea.sflag [#allocation6], %s1986_s0 }
 0x4b1   : > { %p2419_p7 = pnand %p2430_p4, %p4082_p10 }
 0x4b3   : > { %2982 = dma.done.wait (!%p2419_p7), %s1987_s30, 2048  }
 0x4b4   : > { %2984 = vsyncadd (!%p2419_p7), %s1987_s30, 4294965248  ;;  %s1996_s29 = scalar_lea.sflag [#allocation15], %s1986_s0 }
 0x4b5   : > { %2986 = dma.done.wait (!%p2419_p7), %s1996_s29, 2048  }
 0x4b6   : > { %2988 = vsyncadd (!%p2419_p7), %s1996_s29, 4294965248  ;;  %s31_s14 = sadd.s32 1, %s3043_s14   ;;  %s4084_s27 = sld [smem:[#allocation22_spill]] }
 0x4b7   : > { %p3948_p2 = scmp.ge.s32.totalorder %s31_s14, 6   ;;  %s4085_s28 = sld [smem:[#allocation23_spill]] }
 0x4b8   : > { %s4086_s29 = sld [smem:[#allocation28_spill]]  ;;  %s4087_s22 = sld [smem:[#allocation26_spill]] }
 0x4b9   : > { %s4088_s23 = sld [smem:[#allocation27_spill]]  ;;  %s4089_s24 = smov %s2995_s25 }
 0x4ba   : > { %s4090_s25 = smov %s2999_s26  ;;  %s4091_s26 = smov %s3400_s4 }
 0x4bb   : > { %s4092_s30 = smov %s3019_s8  ;;  %s4093_s8 = smov %s3023_s9 }
 0x4bc   : > { %s4094_s9 = smov %s3334_s7  ;;  %s4095_s10 = smov %s3035_s12 }
 0x4bd   : > { %s4096_s11 = smov %s3039_s13  ;;  %30 = sbr.rel (!%p3948_p2) target bundleno = 23 (0x17), region = 146 }
 0x4be   : > { %s4097_s12 = smov %s4087_s22 }
 0x4bf   : > { %s4098_s13 = smov %s4088_s23 }
 0x4c4   :  { %2001 = vsyncpa [#allocation5], 1 }
 0x4c5   :  { %2003 = vsyncpa [#allocation5 + $0x1], 1 }
 0x4c6   :  { %2004 = vsyncpa [#allocation8], 1 }
 0x4c7   :  { %2006 = vsyncpa [#allocation8 + $0x1], 1 }
 0x4c8   :  { %2007 = vsyncpa [#allocation11], 1 }
 0x4c9   :  { %2008 = vsyncpa [#allocation6], 1 }
 0x4ca   :  { %2010 = vsyncpa [#allocation6 + $0x1], 1 }
 0x4cb   :  { %2011 = vsyncpa [#allocation15], 1 }
 0x4cc   :  { %2013 = vsyncpa [#allocation15 + $0x1], 1 }

</bundles_post_ra>
